<compile_context>
chip_gen: v5e
topology: v5e:2x2
jax: 0.10.0
libtpu: 0.0.40
codegen_flags: <defaults>
</compile_context>

<pallas_src>
import jax
import jax.numpy as jnp
import numpy as np
from jax.experimental import pallas as pl
from jax.experimental.pallas import tpu as pltpu


def _round_up(n, m=128):
    return ((n + m - 1) // m) * m


def _pick_tb(batch_p, cap=512):
    """Pick a batch tile that divides batch_p (a multiple of 128) exactly.

    Prefer a tile that yields >= 2 grid steps so the (parallel) batch axis can
    be split across the two TensorCores on v7x.  Raise `cap` (e.g. 1024-2048)
    on v6e/v5e for very large batches to amortize per-step overhead further.
    """
    candidates = [c for c in (2048, 1024, 512, 256, 128) if c <= cap]
    for c in candidates:
        if batch_p % c == 0 and batch_p // c >= 2:
            return c
    for c in candidates:
        if batch_p % c == 0:
            return c
    return 128


# ----------------------------- kernel ---------------------------------------


def _layer(h_bf16, w_ref, b_ref, relu):
    # bf16 x bf16 -> f32 accumulation on the MXU; bias add + ReLU in f32.
    y = jnp.dot(h_bf16, w_ref[...], preferred_element_type=jnp.float32) + b_ref[...]
    if relu:
        y = jnp.maximum(y, 0.0)
    return y.astype(jnp.bfloat16)


def autoencoder_kernel(x_ref,
                       w1_ref, b1_ref, w2_ref, b2_ref, w34_ref, b34_ref,
                       w5_ref, b5_ref, w6_ref, b6_ref,
                       o_ref):
    h = x_ref[...]                                    # already bf16 (wrapper cast)
    h = _layer(h, w1_ref, b1_ref, relu=True)          # L1: Din -> 250
    h = _layer(h, w2_ref, b2_ref, relu=True)          # L2: 250 -> 200
    h = _layer(h, w34_ref, b34_ref, relu=True)        # fused L3+L4: 200 -> 200 (ReLU of L4)
    h = _layer(h, w5_ref, b5_ref, relu=True)          # L5: 200 -> 250
    y = jnp.dot(h, w6_ref[...], preferred_element_type=jnp.float32) + b6_ref[...]
    o_ref[...] = y.astype(o_ref.dtype)                # L6: 250 -> Din (no ReLU)


# ----------------------------- params ----------------------------------------


def prepare_params(params):
    """Fuse the ReLU-free L3/L4 pair in f32, then zero-pad every dim to a
    multiple of 128; weights -> bf16, biases -> f32 row vectors.

    Returns 5 (W, b) pairs in kernel order.
    """
    (w1, b1), (w2, b2), (w3, b3), (w4, b4), (w5, b5), (w6, b6) = params
    w3f = w3.astype(jnp.float32)
    w4f = w4.astype(jnp.float32)
    w34 = jnp.dot(w3f, w4f)                                        # (200, 200), exact fusion
    b34 = jnp.dot(b3.astype(jnp.float32).reshape(1, -1), w4f) \
        + b4.astype(jnp.float32).reshape(1, -1)
    fused = [(w1, b1), (w2, b2), (w34, b34), (w5, b5), (w6, b6)]

    padded = []
    for w, b in fused:
        din, dout = w.shape
        din_p, dout_p = _round_up(din), _round_up(dout)
        wp = jnp.zeros((din_p, dout_p), jnp.bfloat16).at[:din, :dout].set(
            w.astype(jnp.bfloat16))
        bp = jnp.zeros((1, dout_p), jnp.float32).at[:, :dout].set(
            b.astype(jnp.float32).reshape(1, dout))
        padded.append((wp, bp))
    return padded


# ----------------------------- wrapper ---------------------------------------


def autoencoder_forward(x, params, *, tb=None, tb_cap=512, out_dtype=jnp.float32):
    """x: [batch, input_dim] f32; params: list of 6 (W[in,out], b[1,out]) pairs.

    out_dtype=jnp.bfloat16 halves output writeback (useful on v5e) if callers
    accept reduced output precision; default keeps f32 to match the module.
    """
    batch, input_dim = x.shape
    pparams = prepare_params(params)                 # 5 fused + padded layers
    din_p = pparams[0][0].shape[0]                   # padded input/output width
    max_w = max(w.shape[1] for w, _ in pparams)

    # Batch padding: only to the 128-sublane/MXU grain, never to a tb multiple.
    batch_p = _round_up(batch, 128)
    if tb is None:
        tb = _pick_tb(batch_p, cap=tb_cap)
    elif batch_p % tb != 0:
        batch_p = _round_up(batch_p, tb)             # explicit tb: keep exact division
    assert batch_p % tb == 0

    # Pad + cast to bf16 in one wrapper op; skip entirely when already aligned.
    x_bf = x.astype(jnp.bfloat16)
    padded_io = (batch_p != batch) or (din_p != input_dim)
    x_p = jnp.pad(x_bf, ((0, batch_p - batch), (0, din_p - input_dim))) if padded_io else x_bf

    flat = [x_p]
    in_specs = [pl.BlockSpec((tb, din_p), lambda i: (i, 0))]
    for w, b in pparams:
        flat.append(w)
        flat.append(b)
        # Constant index_map -> weights/biases DMA'd once, VMEM-resident.
        in_specs.append(pl.BlockSpec(w.shape, lambda i: (0, 0)))
        in_specs.append(pl.BlockSpec(b.shape, lambda i: (0, 0)))

    out_itemsize = jnp.dtype(out_dtype).itemsize

    # Cost estimate (padded problem, 5 fused matmuls).
    flops = sum(2 * batch_p * w.shape[0] * w.shape[1] for w, _ in pparams)
    weight_bytes = sum(w.size * w.dtype.itemsize + b.size * b.dtype.itemsize
                       for w, b in pparams)
    bytes_accessed = (batch_p * din_p * 2            # bf16 input
                      + batch_p * din_p * out_itemsize
                      + weight_bytes)
    cost = pl.CostEstimate(flops=flops, transcendentals=0,
                           bytes_accessed=bytes_accessed)

    # VMEM budget: (double-buffered) resident weights + double-buffered bf16
    # in / out tiles + activation slack.  Cap at 40 MiB so v7x (64 MiB/TC)
    # keeps headroom for Mosaic scratch; fine on v5e/v6e (128 MiB).
    io_bytes = 2 * tb * din_p * 2 + 2 * tb * din_p * out_itemsize
    act_bytes = 6 * tb * max_w * 4
    vmem_limit = min(40 << 20, max(16 << 20,
                                   int(1.5 * (2 * weight_bytes + io_bytes + act_bytes))))

    out_p = pl.pallas_call(
        autoencoder_kernel,
        out_shape=jax.ShapeDtypeStruct((batch_p, din_p), out_dtype),
        grid_spec=pltpu.PrefetchScalarGridSpec(
            num_scalar_prefetch=0,
            grid=(batch_p // tb,),
            in_specs=in_specs,
            out_specs=pl.BlockSpec((tb, din_p), lambda i: (i, 0)),
        ),
        compiler_params=pltpu.CompilerParams(
            dimension_semantics=("parallel",),
            vmem_limit_bytes=vmem_limit,
        ),
        cost_estimate=cost,
    )(*flat)

    if padded_io:
        out_p = out_p[:batch, :input_dim]
    return out_p


# ----------------------------- init & references -----------------------------


def init_params(key, input_dim):
    """PyTorch nn.Linear default init: U(-1/sqrt(in), 1/sqrt(in))."""
    layer_dims = [(input_dim, 250), (250, 200), (200, 50),
                  (50, 200), (200, 250), (250, input_dim)]
    params = []
    for din, dout in layer_dims:
        key, kw, kb = jax.random.split(key, 3)
        bound = 1.0 / np.sqrt(din)
        w = jax.random.uniform(kw, (din, dout), jnp.float32, -bound, bound)
        b = jax.random.uniform(kb, (1, dout), jnp.float32, -bound, bound)
        params.append((w, b))
    return params


def reference_forward_f32(x, params):
    """Pure-f32 reference matching the PyTorch module layer by layer."""
    h = x
    for i, (w, b) in enumerate(params):
        h = h @ w + b
        if i not in (2, 5):      # no ReLU after latent (L3) or final (L6) layer
            h = jnp.maximum(h, 0.0)
    return h


def reference_forward_mixed(x, params):
    """Mirrors kernel numerics: f32 L3/L4 fusion, bf16 matmul operands,
    f32 accumulate/bias/ReLU, bf16 activation carry."""
    (w1, b1), (w2, b2), (w3, b3), (w4, b4), (w5, b5), (w6, b6) = params
    w34 = jnp.dot(w3.astype(jnp.float32), w4.astype(jnp.float32))
    b34 = jnp.dot(b3.astype(jnp.float32).reshape(1, -1), w4.astype(jnp.float32)) \
        + b4.astype(jnp.float32).reshape(1, -1)
    layers = [(w1, b1, True), (w2, b2, True), (w34, b34, True),
              (w5, b5, True), (w6, b6, False)]
    h = x.astype(jnp.bfloat16)
    y = None
    for w, b, relu in layers:
        y = jnp.dot(h, w.astype(jnp.bfloat16),
                    preferred_element_type=jnp.float32) + b.astype(jnp.float32).reshape(1, -1)
        if relu:
            y = jnp.maximum(y, 0.0)
        h = y.astype(jnp.bfloat16)
    return y


def _check(out, x, params):
    ref_mixed = reference_forward_mixed(x, params)
    np.testing.assert_allclose(np.asarray(out, dtype=np.float32),
                               np.asarray(ref_mixed), rtol=2e-3, atol=2e-3)
    ref_f32 = reference_forward_f32(x, params)
    np.testing.assert_allclose(np.asarray(out, dtype=np.float32),
                               np.asarray(ref_f32), rtol=1e-1, atol=1e-1)


if __name__ == "__main__":
    key = jax.random.PRNGKey(0)

    # Case 1: toy shapes (batch=8, input_dim=64); batch padded to one 128-row tile.
    key, kx1 = jax.random.split(key)
    x1 = jax.random.normal(kx1, (8, 64), jnp.float32)
    params1 = init_params(jax.random.PRNGKey(1), 64)
    out1 = jax.block_until_ready(autoencoder_forward(x1, params1))
    _check(out1, x1, params1)

    # Case 2: non-128 batch + non-128 input_dim, multi-step grid (tb=128, batch_p=256).
    key, kx2 = jax.random.split(key)
    x2 = jax.random.normal(kx2, (200, 96), jnp.float32)
    params2 = init_params(jax.random.PRNGKey(2), 96)
    out2 = jax.block_until_ready(autoencoder_forward(x2, params2, tb=128))
    _check(out2, x2, params2)

    # Case 3: fully 128-aligned shapes hit the no-pad / no-slice fast path,
    # and exercise auto tile selection (batch_p=256 -> tb=128, 2 grid steps).
    key, kx3 = jax.random.split(key)
    x3 = jax.random.normal(kx3, (256, 128), jnp.float32)
    params3 = init_params(jax.random.PRNGKey(3), 128)
    out3 = jax.block_until_ready(autoencoder_forward(x3, params3))
    _check(out3, x3, params3)

    print("KERNEL_OK")
</pallas_src>

<mosaic_0001>
module attributes {stable_mosaic.version = 11 : i64} {
  func.func @autoencoder_kernel(%arg0: i32, %arg1: memref<128x128xbf16, #tpu.memory_space<vmem>>, %arg2: memref<128x256xbf16, #tpu.memory_space<vmem>>, %arg3: memref<1x256xf32, #tpu.memory_space<vmem>>, %arg4: memref<256x256xbf16, #tpu.memory_space<vmem>>, %arg5: memref<1x256xf32, #tpu.memory_space<vmem>>, %arg6: memref<256x256xbf16, #tpu.memory_space<vmem>>, %arg7: memref<1x256xf32, #tpu.memory_space<vmem>>, %arg8: memref<256x256xbf16, #tpu.memory_space<vmem>>, %arg9: memref<1x256xf32, #tpu.memory_space<vmem>>, %arg10: memref<256x128xbf16, #tpu.memory_space<vmem>>, %arg11: memref<1x128xf32, #tpu.memory_space<vmem>>, %arg12: memref<128x128xf32, #tpu.memory_space<vmem>>) attributes {dimension_semantics = [#tpu.dimension_semantics<parallel>], iteration_bounds = array<i64: 1>, scalar_prefetch = 0 : i64, scratch_operands = 0 : i64, tpu.core_type = #tpu.core_type<tc>, window_params = [{transform_indices = @transform_0, window_bounds = array<i64: 128, 128>}, {pipeline_mode = #tpu.pipeline_mode<synchronous>, transform_indices = @transform_1, window_bounds = array<i64: 128, 256>}, {pipeline_mode = #tpu.pipeline_mode<synchronous>, transform_indices = @transform_2, window_bounds = array<i64: 1, 256>}, {pipeline_mode = #tpu.pipeline_mode<synchronous>, transform_indices = @transform_3, window_bounds = array<i64: 256, 256>}, {pipeline_mode = #tpu.pipeline_mode<synchronous>, transform_indices = @transform_4, window_bounds = array<i64: 1, 256>}, {pipeline_mode = #tpu.pipeline_mode<synchronous>, transform_indices = @transform_5, window_bounds = array<i64: 256, 256>}, {pipeline_mode = #tpu.pipeline_mode<synchronous>, transform_indices = @transform_6, window_bounds = array<i64: 1, 256>}, {pipeline_mode = #tpu.pipeline_mode<synchronous>, transform_indices = @transform_7, window_bounds = array<i64: 256, 256>}, {pipeline_mode = #tpu.pipeline_mode<synchronous>, transform_indices = @transform_8, window_bounds = array<i64: 1, 256>}, {pipeline_mode = #tpu.pipeline_mode<synchronous>, transform_indices = @transform_9, window_bounds = array<i64: 256, 128>}, {pipeline_mode = #tpu.pipeline_mode<synchronous>, transform_indices = @transform_10, window_bounds = array<i64: 1, 128>}, {transform_indices = @transform_11, window_bounds = array<i64: 128, 128>}]} {
    %c0 = arith.constant 0 : index
    %c0_0 = arith.constant 0 : index
    %0 = vector.load %arg1[%c0, %c0_0] : memref<128x128xbf16, #tpu.memory_space<vmem>>, vector<128x128xbf16>
    %c0_1 = arith.constant 0 : index
    %c0_2 = arith.constant 0 : index
    %1 = vector.load %arg2[%c0_1, %c0_2] : memref<128x256xbf16, #tpu.memory_space<vmem>>, vector<128x256xbf16>
    %cst = arith.constant dense<0.000000e+00> : vector<128x256xf32>
    %2 = tpu.matmul %0, %1, %cst {dimension_numbers = #tpu.dot_dimension_numbers<[1], [0], [0], [1], [0, 0, 1, 1], [], []>} : vector<128x128xbf16>, vector<128x256xbf16>, vector<128x256xf32> -> vector<128x256xf32>
    %c0_3 = arith.constant 0 : index
    %c0_4 = arith.constant 0 : index
    %3 = vector.load %arg3[%c0_3, %c0_4] : memref<1x256xf32, #tpu.memory_space<vmem>>, vector<1x256xf32>
    %4 = vector.broadcast %3 : vector<1x256xf32> to vector<128x256xf32>
    %5 = arith.addf %2, %4 : vector<128x256xf32>
    %cst_5 = arith.constant 0.000000e+00 : f32
    %6 = vector.broadcast %cst_5 : f32 to vector<128x256xf32>
    %7 = arith.maximumf %5, %6 : vector<128x256xf32>
    %8 = arith.truncf %7 : vector<128x256xf32> to vector<128x256xbf16>
    %c0_6 = arith.constant 0 : index
    %c0_7 = arith.constant 0 : index
    %9 = vector.load %arg4[%c0_6, %c0_7] : memref<256x256xbf16, #tpu.memory_space<vmem>>, vector<256x256xbf16>
    %cst_8 = arith.constant dense<0.000000e+00> : vector<128x256xf32>
    %10 = tpu.matmul %8, %9, %cst_8 {dimension_numbers = #tpu.dot_dimension_numbers<[1], [0], [0], [1], [0, 0, 1, 1], [], []>} : vector<128x256xbf16>, vector<256x256xbf16>, vector<128x256xf32> -> vector<128x256xf32>
    %c0_9 = arith.constant 0 : index
    %c0_10 = arith.constant 0 : index
    %11 = vector.load %arg5[%c0_9, %c0_10] : memref<1x256xf32, #tpu.memory_space<vmem>>, vector<1x256xf32>
    %12 = vector.broadcast %11 : vector<1x256xf32> to vector<128x256xf32>
    %13 = arith.addf %10, %12 : vector<128x256xf32>
    %cst_11 = arith.constant 0.000000e+00 : f32
    %14 = vector.broadcast %cst_11 : f32 to vector<128x256xf32>
    %15 = arith.maximumf %13, %14 : vector<128x256xf32>
    %16 = arith.truncf %15 : vector<128x256xf32> to vector<128x256xbf16>
    %c0_12 = arith.constant 0 : index
    %c0_13 = arith.constant 0 : index
    %17 = vector.load %arg6[%c0_12, %c0_13] : memref<256x256xbf16, #tpu.memory_space<vmem>>, vector<256x256xbf16>
    %cst_14 = arith.constant dense<0.000000e+00> : vector<128x256xf32>
    %18 = tpu.matmul %16, %17, %cst_14 {dimension_numbers = #tpu.dot_dimension_numbers<[1], [0], [0], [1], [0, 0, 1, 1], [], []>} : vector<128x256xbf16>, vector<256x256xbf16>, vector<128x256xf32> -> vector<128x256xf32>
    %c0_15 = arith.constant 0 : index
    %c0_16 = arith.constant 0 : index
    %19 = vector.load %arg7[%c0_15, %c0_16] : memref<1x256xf32, #tpu.memory_space<vmem>>, vector<1x256xf32>
    %20 = vector.broadcast %19 : vector<1x256xf32> to vector<128x256xf32>
    %21 = arith.addf %18, %20 : vector<128x256xf32>
    %cst_17 = arith.constant 0.000000e+00 : f32
    %22 = vector.broadcast %cst_17 : f32 to vector<128x256xf32>
    %23 = arith.maximumf %21, %22 : vector<128x256xf32>
    %24 = arith.truncf %23 : vector<128x256xf32> to vector<128x256xbf16>
    %c0_18 = arith.constant 0 : index
    %c0_19 = arith.constant 0 : index
    %25 = vector.load %arg8[%c0_18, %c0_19] : memref<256x256xbf16, #tpu.memory_space<vmem>>, vector<256x256xbf16>
    %cst_20 = arith.constant dense<0.000000e+00> : vector<128x256xf32>
    %26 = tpu.matmul %24, %25, %cst_20 {dimension_numbers = #tpu.dot_dimension_numbers<[1], [0], [0], [1], [0, 0, 1, 1], [], []>} : vector<128x256xbf16>, vector<256x256xbf16>, vector<128x256xf32> -> vector<128x256xf32>
    %c0_21 = arith.constant 0 : index
    %c0_22 = arith.constant 0 : index
    %27 = vector.load %arg9[%c0_21, %c0_22] : memref<1x256xf32, #tpu.memory_space<vmem>>, vector<1x256xf32>
    %28 = vector.broadcast %27 : vector<1x256xf32> to vector<128x256xf32>
    %29 = arith.addf %26, %28 : vector<128x256xf32>
    %cst_23 = arith.constant 0.000000e+00 : f32
    %30 = vector.broadcast %cst_23 : f32 to vector<128x256xf32>
    %31 = arith.maximumf %29, %30 : vector<128x256xf32>
    %32 = arith.truncf %31 : vector<128x256xf32> to vector<128x256xbf16>
    %c0_24 = arith.constant 0 : index
    %c0_25 = arith.constant 0 : index
    %33 = vector.load %arg10[%c0_24, %c0_25] : memref<256x128xbf16, #tpu.memory_space<vmem>>, vector<256x128xbf16>
    %cst_26 = arith.constant dense<0.000000e+00> : vector<128x128xf32>
    %34 = tpu.matmul %32, %33, %cst_26 {dimension_numbers = #tpu.dot_dimension_numbers<[1], [0], [0], [1], [0, 0, 1, 1], [], []>} : vector<128x256xbf16>, vector<256x128xbf16>, vector<128x128xf32> -> vector<128x128xf32>
    %c0_27 = arith.constant 0 : index
    %c0_28 = arith.constant 0 : index
    %35 = vector.load %arg11[%c0_27, %c0_28] : memref<1x128xf32, #tpu.memory_space<vmem>>, vector<1x128xf32>
    %36 = vector.broadcast %35 : vector<1x128xf32> to vector<128x128xf32>
    %37 = arith.addf %34, %36 : vector<128x128xf32>
    %c0_29 = arith.constant 0 : index
    %c0_30 = arith.constant 0 : index
    %38 = vector.load %arg12[%c0_29, %c0_30] : memref<128x128xf32, #tpu.memory_space<vmem>>, vector<128x128xf32>
    tpu.vector_store %arg12[%c0_29, %c0_30], %37 {strides = array<i32>} : memref<128x128xf32, #tpu.memory_space<vmem>>, vector<128x128xf32>,
    return
  }
  func.func @transform_0(%arg0: i32) -> (i32, i32) {
    %c0_i32 = arith.constant 0 : i32
    %c0_i32_0 = arith.constant 0 : i32
    return %arg0, %c0_i32 : i32, i32
  }
  func.func @transform_1(%arg0: i32) -> (i32, i32) {
    %c0_i32 = arith.constant 0 : i32
    %c0_i32_0 = arith.constant 0 : i32
    %c0_i32_1 = arith.constant 0 : i32
    return %c0_i32, %c0_i32_0 : i32, i32
  }
  func.func @transform_2(%arg0: i32) -> (i32, i32) {
    %c0_i32 = arith.constant 0 : i32
    %c0_i32_0 = arith.constant 0 : i32
    %c0_i32_1 = arith.constant 0 : i32
    return %c0_i32, %c0_i32_0 : i32, i32
  }
  func.func @transform_3(%arg0: i32) -> (i32, i32) {
    %c0_i32 = arith.constant 0 : i32
    %c0_i32_0 = arith.constant 0 : i32
    %c0_i32_1 = arith.constant 0 : i32
    return %c0_i32, %c0_i32_0 : i32, i32
  }
  func.func @transform_4(%arg0: i32) -> (i32, i32) {
    %c0_i32 = arith.constant 0 : i32
    %c0_i32_0 = arith.constant 0 : i32
    %c0_i32_1 = arith.constant 0 : i32
    return %c0_i32, %c0_i32_0 : i32, i32
  }
  func.func @transform_5(%arg0: i32) -> (i32, i32) {
    %c0_i32 = arith.constant 0 : i32
    %c0_i32_0 = arith.constant 0 : i32
    %c0_i32_1 = arith.constant 0 : i32
    return %c0_i32, %c0_i32_0 : i32, i32
  }
  func.func @transform_6(%arg0: i32) -> (i32, i32) {
    %c0_i32 = arith.constant 0 : i32
    %c0_i32_0 = arith.constant 0 : i32
    %c0_i32_1 = arith.constant 0 : i32
    return %c0_i32, %c0_i32_0 : i32, i32
  }
  func.func @transform_7(%arg0: i32) -> (i32, i32) {
    %c0_i32 = arith.constant 0 : i32
    %c0_i32_0 = arith.constant 0 : i32
    %c0_i32_1 = arith.constant 0 : i32
    return %c0_i32, %c0_i32_0 : i32, i32
  }
  func.func @transform_8(%arg0: i32) -> (i32, i32) {
    %c0_i32 = arith.constant 0 : i32
    %c0_i32_0 = arith.constant 0 : i32
    %c0_i32_1 = arith.constant 0 : i32
    return %c0_i32, %c0_i32_0 : i32, i32
  }
  func.func @transform_9(%arg0: i32) -> (i32, i32) {
    %c0_i32 = arith.constant 0 : i32
    %c0_i32_0 = arith.constant 0 : i32
    %c0_i32_1 = arith.constant 0 : i32
    return %c0_i32, %c0_i32_0 : i32, i32
  }
  func.func @transform_10(%arg0: i32) -> (i32, i32) {
    %c0_i32 = arith.constant 0 : i32
    %c0_i32_0 = arith.constant 0 : i32
    %c0_i32_1 = arith.constant 0 : i32
    return %c0_i32, %c0_i32_0 : i32, i32
  }
  func.func @transform_11(%arg0: i32) -> (i32, i32) {
    %c0_i32 = arith.constant 0 : i32
    %c0_i32_0 = arith.constant 0 : i32
    return %arg0, %c0_i32 : i32, i32
  }
}

</mosaic_0001>

<bundles_post_ra>
// kernel: tpu_custom_call.1
= control target key start
LH: loop header
LB: loop body
LE: loop exit
PB: predicated region body
PF: predicated region fallthrough
CT: control target
= control target key end

     0   :  { %16 = vsyncpa [#allocation3], 0  ;;  %s3232_s0 = inlined_call_operand.hbm [shape: bf16[128,128], index: 0, kind: input, shape index: {}]   ;;  %s3233_s1 = inlined_call_operand.hbm [shape: bf16[128,256], index: 1, kind: input, shape index: {}]   ;;  %s3234_s2 = inlined_call_operand.hbm [shape: f32[1,256], index: 2, kind: input, shape index: {}]   ;;  %s3235_s3 = inlined_call_operand.hbm [shape: bf16[256,256], index: 3, kind: input, shape index: {}]   ;;  %s3236_s4 = inlined_call_operand.vmem [shape: f32[1,256], index: 4, kind: input, shape index: {}]   ;;  %s3237_s5 = inlined_call_operand.hbm [shape: bf16[256,256], index: 5, kind: input, shape index: {}]   ;;  %s3238_s6 = inlined_call_operand.vmem [shape: f32[1,256], index: 6, kind: input, shape index: {}]   ;;  %s3239_s7 = inlined_call_operand.hbm [shape: bf16[256,256], index: 7, kind: input, shape index: {}]   ;;  %s3240_s8 = inlined_call_operand.vmem [shape: f32[1,256], index: 8, kind: input, shape index: {}]   ;;  %s3241_s9 = inlined_call_operand.hbm [shape: bf16[256,128], index: 9, kind: input, shape index: {}]   ;;  %s3242_s10 = inlined_call_operand.vmem [shape: f32[1,128], index: 10, kind: input, shape index: {}]   ;;  %s3243_s11 = inlined_call_operand.hbm [shape: f32[128,128], index: 11, kind: output, shape index: {}]  }
   0x1   :  { %17 = vsyncpa [#allocation6], 0 }
   0x2   :  { %18 = vsyncpa [#allocation9], 0 }
   0x3   :  { %19 = vsyncpa [#allocation12], 0  ;;  %s38_s19 = sshll.u32 %s3233_s1, 4  ;;  %s39_s19 = int_to_ptr.hbm [resolvable:$true] %s38_s19 }
   0x4   :  { %20 = vsyncpa [#allocation4], 0  ;;  %s2947_s20 = smov [#allocation5]   ;;  %s62_s24 = sshll.u32 %s3235_s3, 4  ;;  %s63_s24 = int_to_ptr.hbm [resolvable:$true] %s62_s24 }
   0x5   :  { %s40_s21 = sshll.u32 %s2947_s20, 4  ;;  %s2948_s25 = smov 128   ;;  %s41_s21 = int_to_ptr.vmem [resolvable:$true] %s40_s21 }
   0x6   :  { %s2949_s26 = smov 8   ;;  %s2950_s27 = smov [#allocation8]  }
   0x7   :  { %46 = dma.hbm_to_vmem [thread:$0]  %s39_s19, 2048, %s41_s21, [#allocation6], %s2948_s25, %s2948_s25, %s2949_s26  }
   0x8   :  { %s64_s28 = sshll.u32 %s2950_s27, 4  ;;  %s92_s30 = sshll.u32 %s3239_s7, 4  ;;  %s65_s28 = int_to_ptr.vmem [resolvable:$true] %s64_s28  ;;  %s93_s30 = int_to_ptr.hbm [resolvable:$true] %s92_s30 }
   0x9   :  { %70 = dma.hbm_to_vmem [thread:$0]  %s63_s24, 4096, %s65_s28, [#allocation9], %s2948_s25, %s2948_s25, %s2949_s26  }
   0xa   :  { %s25_s13 = sshll.u32 %s3232_s0, 4  ;;  %s2951_s14 = smov [#allocation11]   ;;  %s26_s13 = int_to_ptr.hbm [resolvable:$true] %s25_s13 }
   0xb   :  { %s94_s15 = sshll.u32 %s2951_s14, 4  ;;  %s2952_s16 = smov [#allocation2]   ;;  %s95_s15 = int_to_ptr.vmem [resolvable:$true] %s94_s15 }
   0xc   :  { %100 = dma.hbm_to_vmem [thread:$0]  %s93_s30, 4096, %s95_s15, [#allocation12], %s2948_s25, %s2948_s25, %s2949_s26  }
   0xd   :  { %s27_s7 = sshll.u32 %s2952_s16, 4  ;;  %s2953_s17 = smov 64   ;;  %s28_s7 = int_to_ptr.vmem [resolvable:$true] %s27_s7 }
   0xe   :  { %s2954_s18 = smov 4   ;;  %s52_s21 = sshll.u32 %s3234_s2, 4  ;;  %s53_s21 = int_to_ptr.hbm [resolvable:$true] %s52_s21 }
   0xf   :  { %33 = dma.hbm_to_vmem [thread:$0]  %s26_s13, 1024, %s28_s7, [#allocation3], %s2953_s17, %s2953_s17, %s2954_s18  }
  0x10   :  { %s2955_s0 = smov [#allocation7]   ;;  %s77_s27 = sshll.u32 %s3237_s5, 4  ;;  %s78_s27 = int_to_ptr.hbm [resolvable:$true] %s77_s27 }
  0x11   :  { %s54_s22 = sshll.u32 %s2955_s0, 4  ;;  %s2956_s28 = smov [#allocation10]   ;;  %s55_s22 = int_to_ptr.vmem [resolvable:$true] %s54_s22 }
  0x12   :  { %57 = dma.hbm_to_vmem [thread:$0]  %s53_s21, 32, %s55_s22, [#allocation6]  }
  0x13   :  { %s79_s29 = sshll.u32 %s2956_s28, 4  ;;  %s107_s3 = sshll.u32 %s3241_s9, 4  ;;  %s80_s29 = int_to_ptr.vmem [resolvable:$true] %s79_s29  ;;  %s108_s3 = int_to_ptr.hbm [resolvable:$true] %s107_s3 }
  0x14   :  { %85 = dma.hbm_to_vmem [thread:$0]  %s78_s27, 4096, %s80_s29, [#allocation9], %s2948_s25, %s2948_s25, %s2949_s26  }
  0x15   :  { %s2957_s2 = smov [#allocation13]  }
  0x16   :  { %s109_s12 = sshll.u32 %s2957_s2, 4  ;;  %s110_s12 = int_to_ptr.vmem [resolvable:$true] %s109_s12 }
  0x17   :  { %115 = dma.hbm_to_vmem [thread:$0]  %s108_s3, 2048, %s110_s12, [#allocation12], %s2953_s17, %s2953_s17, %s2954_s18  }
  0x18   :  { %2937 = dma.done.wait [#allocation3], 1024  }
  0x19   :  { %2938 = vsyncadd [#allocation3], 4294966272 }
  0x1a   :  { %2939 = dma.done.wait [#allocation6], 2080  }
  0x1b   :  { %2940 = vsyncadd [#allocation6], 4294965216 }
  0x1c   :  { %2941 = dma.done.wait [#allocation9], 8192  }
  0x1d   :  { %2942 = vsyncadd [#allocation9], 4294959104 }
  0x1e   :  { %2943 = dma.done.wait [#allocation12], 6144  }
  0x1f   :  { %2944 = vsyncadd [#allocation12], 4294961152  ;;  %v2142_v0 = vld [vmem:[#allocation5 + $0x70] sm:$0xf]  ;;  %v2619_v1 = vld [vmem:[#allocation5 + $0x74] sm:$0xf0] }
  0x20   :  { %v2618_v2 = vld [vmem:[#allocation5 + $0x74] sm:$0xf]  ;;  %v2143_v3 = vor.u32 %v2619_v1, %v2142_v0  ;;  %v2144_v4 = vld [vmem:[#allocation5 + $0x78] sm:$0xf0]  ;;  %v2134_v5 = vld [vmem:[#allocation5 + $0x60] sm:$0xf] }
  0x21   :  { %v2617_v6 = vld [vmem:[#allocation5 + $0x64] sm:$0xf0]  ;;  %v2147_v7 = vor.u32 %v2618_v2, %v2144_v4  ;;  %v2616_v8 = vld [vmem:[#allocation5 + $0x64] sm:$0xf]  ;;  %v2136_v9 = vld [vmem:[#allocation5 + $0x68] sm:$0xf0] }
  0x22   :  { %312 = vmatpush.bf16.msra.mxu0 %v2143_v3  ;;  %v2135_v10 = vor.u32 %v2617_v6, %v2134_v5  ;;  %v2139_v11 = vor.u32 %v2616_v8, %v2136_v9  ;;  %v2126_v12 = vld [vmem:[#allocation5 + $0x50] sm:$0xf]  ;;  %v2615_v13 = vld [vmem:[#allocation5 + $0x54] sm:$0xf0]  ;;  %v2614_v14 = vld [vmem:[#allocation5 + $0x54] sm:$0xf] }
  0x23   :  { %361 = vmatpush.bf16.msra.mxu1 %v2147_v7  ;;  %v2128_v15 = vld [vmem:[#allocation5 + $0x58] sm:$0xf0]  ;;  %v2127_v16 = vor.u32 %v2615_v13, %v2126_v12  ;;  %v2118_v18 = vld [vmem:[#allocation5 + $0x40] sm:$0xf]  ;;  %v2613_v19 = vld [vmem:[#allocation5 + $0x44] sm:$0xf0] }
  0x24   :  { %v2131_v17 = vor.u32 %v2614_v14, %v2128_v15  ;;  %v2612_v20 = vld [vmem:[#allocation5 + $0x44] sm:$0xf]  ;;  %v2120_v21 = vld [vmem:[#allocation5 + $0x48] sm:$0xf0]  ;;  %v2119_v22 = vor.u32 %v2613_v19, %v2118_v18  ;;  %v2110_v24 = vld [vmem:[#allocation5 + $0x30] sm:$0xf] }
  0x25   :  { %v2123_v23 = vor.u32 %v2612_v20, %v2120_v21  ;;  %v2611_v25 = vld [vmem:[#allocation5 + $0x34] sm:$0xf0]  ;;  %v2610_v26 = vld [vmem:[#allocation5 + $0x34] sm:$0xf]  ;;  %v2112_v27 = vld [vmem:[#allocation5 + $0x38] sm:$0xf0] }
  0x26   :  { %313 = vmatpush.bf16.msra.mxu0 %v2135_v10  ;;  %v2111_v28 = vor.u32 %v2611_v25, %v2110_v24  ;;  %v2115_v29 = vor.u32 %v2610_v26, %v2112_v27  ;;  %v2102_v30 = vld [vmem:[#allocation5 + $0x20] sm:$0xf]  ;;  %v2609_v31 = vld [vmem:[#allocation5 + $0x24] sm:$0xf0]  ;;  %v2608_v32 = vld [vmem:[#allocation5 + $0x24] sm:$0xf] }
  0x27   :  { %362 = vmatpush.bf16.msra.mxu1 %v2139_v11  ;;  %v2104_v33 = vld [vmem:[#allocation5 + $0x28] sm:$0xf0]  ;;  %v2103_v34 = vor.u32 %v2609_v31, %v2102_v30  ;;  %v2094_v36 = vld [vmem:[#allocation5 + $0x10] sm:$0xf]  ;;  %v2607_v37 = vld [vmem:[#allocation5 + $0x14] sm:$0xf0] }
  0x28   :  { %v2107_v35 = vor.u32 %v2608_v32, %v2104_v33  ;;  %v2606_v38 = vld [vmem:[#allocation5 + $0x14] sm:$0xf]  ;;  %v2096_v39 = vld [vmem:[#allocation5 + $0x18] sm:$0xf0]  ;;  %v2095_v40 = vor.u32 %v2607_v37, %v2094_v36  ;;  %v2086_v42 = vld [vmem:[#allocation5] sm:$0xf] }
  0x29   :  { %v2099_v41 = vor.u32 %v2606_v38, %v2096_v39  ;;  %v2605_v43 = vld [vmem:[#allocation5 + $0x4] sm:$0xf0]  ;;  %v2604_v44 = vld [vmem:[#allocation5 + $0x4] sm:$0xf]  ;;  %v2088_v45 = vld [vmem:[#allocation5 + $0x8] sm:$0xf0] }
  0x2a   :  { %314 = vmatpush.bf16.msra.mxu0 %v2127_v16  ;;  %v2634_v46 = vld [vmem:[#allocation8 + $0x74] sm:$0xf]  ;;  %v2208_v47 = vld [vmem:[#allocation8 + $0x78] sm:$0xf0]  ;;  %v2087_v50 = vor.u32 %v2605_v43, %v2086_v42  ;;  %v2091_v51 = vor.u32 %v2604_v44, %v2088_v45  ;;  %v2632_v55 = vld [vmem:[#allocation8 + $0x64] sm:$0xf] }
  0x2b   :  { %363 = vmatpush.bf16.msra.mxu1 %v2131_v17  ;;  %v2650_v48 = vld [vmem:[#allocation8 + $0xf4] sm:$0xf]  ;;  %v2272_v49 = vld [vmem:[#allocation8 + $0xf8] sm:$0xf0]  ;;  %v2211_v52 = vor.u32 %v2634_v46, %v2208_v47  ;;  %v2200_v56 = vld [vmem:[#allocation8 + $0x68] sm:$0xf0] }
  0x2c   :  { %v2275_v53 = vor.u32 %v2650_v48, %v2272_v49  ;;  %v2596_v54 = vld [vmem:[#allocation2] sm:$0xff]  ;;  %v2203_v58 = vor.u32 %v2632_v55, %v2200_v56  ;;  %v2264_v59 = vld [vmem:[#allocation8 + $0xe8] sm:$0xf0]  ;;  %v2630_v62 = vld [vmem:[#allocation8 + $0x54] sm:$0xf]  ;;  %s2036_s18 = sshll.u32 %s3243_s11, 4  ;;  %s2037_s18 = int_to_ptr.hbm [resolvable:$true] %s2036_s18 }
  0x2d   :  { %v2648_v57 = vld [vmem:[#allocation8 + $0xe4] sm:$0xf]  ;;  %v2192_v63 = vld [vmem:[#allocation8 + $0x58] sm:$0xf0]  ;;  %v2646_v0 = vld [vmem:[#allocation8 + $0xd4] sm:$0xf] }
  0x2e   :  { %315 = vmatpush.bf16.msra.mxu0 %v2119_v22  ;;  %v2267_v60 = vor.u32 %v2648_v57, %v2264_v59  ;;  %v2597_v61 = vld [vmem:[#allocation2 + $0x8] sm:$0xff]  ;;  %v2195_v1 = vor.u32 %v2630_v62, %v2192_v63  ;;  %v2256_v2 = vld [vmem:[#allocation8 + $0xd8] sm:$0xf0]  ;;  %v2598_v4 = vld [vmem:[#allocation2 + $0x10] sm:$0xff] }
  0x2f   :  { %364 = vmatpush.bf16.msra.mxu1 %v2123_v23  ;;  %v2259_v3 = vor.u32 %v2646_v0, %v2256_v2  ;;  %v2628_v5 = vld [vmem:[#allocation8 + $0x44] sm:$0xf]  ;;  %v2184_v6 = vld [vmem:[#allocation8 + $0x48] sm:$0xf0]  ;;  %v2599_v11 = vld [vmem:[#allocation2 + $0x18] sm:$0xff] }
  0x30   :  { %v2644_v7 = vld [vmem:[#allocation8 + $0xc4] sm:$0xf]  ;;  %v2187_v8 = vor.u32 %v2628_v5, %v2184_v6  ;;  %v2248_v9 = vld [vmem:[#allocation8 + $0xc8] sm:$0xf0]  ;;  %v2626_v12 = vld [vmem:[#allocation8 + $0x34] sm:$0xf] }
  0x31   :  { %v2251_v10 = vor.u32 %v2644_v7, %v2248_v9  ;;  %v2176_v13 = vld [vmem:[#allocation8 + $0x38] sm:$0xf0]  ;;  %v2642_v14 = vld [vmem:[#allocation8 + $0xb4] sm:$0xf]  ;;  %v2624_v19 = vld [vmem:[#allocation8 + $0x24] sm:$0xf] }
  0x32   :  { %316 = vmatpush.bf16.msra.mxu0 %v2111_v28  ;;  %v2179_v15 = vor.u32 %v2626_v12, %v2176_v13  ;;  %v2240_v16 = vld [vmem:[#allocation8 + $0xb8] sm:$0xf0]  ;;  %v2168_v20 = vld [vmem:[#allocation8 + $0x28] sm:$0xf0]  ;;  %v2640_v21 = vld [vmem:[#allocation8 + $0xa4] sm:$0xf] }
  0x33   :  { %365 = vmatpush.bf16.msra.mxu1 %v2115_v29  ;;  %v2243_v17 = vor.u32 %v2642_v14, %v2240_v16  ;;  %v2600_v18 = vld [vmem:[#allocation2 + $0x20] sm:$0xff]  ;;  %v2171_v22 = vor.u32 %v2624_v19, %v2168_v20  ;;  %v2232_v23 = vld [vmem:[#allocation8 + $0xa8] sm:$0xf0]  ;;  %v2206_v24 = vld [vmem:[#allocation8 + $0x70] sm:$0xf] }
  0x34   :  { %v2635_v25 = vld [vmem:[#allocation8 + $0x74] sm:$0xf0]  ;;  %v2235_v26 = vor.u32 %v2640_v21, %v2232_v23  ;;  %v2270_v28 = vld [vmem:[#allocation8 + $0xf0] sm:$0xf]  ;;  %v2601_v31 = vld [vmem:[#allocation2 + $0x28] sm:$0xff] }
  0x35   :  { %v2207_v27 = vor.u32 %v2635_v25, %v2206_v24  ;;  %v2651_v29 = vld [vmem:[#allocation8 + $0xf4] sm:$0xf0]  ;;  %v2198_v32 = vld [vmem:[#allocation8 + $0x60] sm:$0xf]  ;;  %v2633_v33 = vld [vmem:[#allocation8 + $0x64] sm:$0xf0] }
  0x36   :  { %317 = vmatpush.bf16.msra.mxu0 %v2103_v34  ;;  %v2271_v30 = vor.u32 %v2651_v29, %v2270_v28  ;;  %v2262_v34 = vld [vmem:[#allocation8 + $0xe0] sm:$0xf]  ;;  %v2649_v36 = vld [vmem:[#allocation8 + $0xe4] sm:$0xf0]  ;;  %v2622_v38 = vld [vmem:[#allocation8 + $0x14] sm:$0xf] }
  0x37   :  { %366 = vmatpush.bf16.msra.mxu1 %v2107_v35  ;;  %656 = vmatpush.bf16.msra.mxu2 %v2207_v27  ;;  %v2199_v35 = vor.u32 %v2633_v33, %v2198_v32  ;;  %v2263_v37 = vor.u32 %v2649_v36, %v2262_v34  ;;  %v2160_v39 = vld [vmem:[#allocation8 + $0x18] sm:$0xf0]  ;;  %v2631_v42 = vld [vmem:[#allocation8 + $0x54] sm:$0xf0]  ;;  %v2254_v43 = vld [vmem:[#allocation8 + $0xd0] sm:$0xf] }
  0x38   :  { %705 = vmatpush.bf16.msra.mxu3 %v2271_v30  ;;  %v2647_v44 = vld [vmem:[#allocation8 + $0xd4] sm:$0xf0]  ;;  %v2638_v47 = vld [vmem:[#allocation8 + $0x94] sm:$0xf]  ;;  %v2224_v48 = vld [vmem:[#allocation8 + $0x98] sm:$0xf0] }
  0x39   :  { %v2255_v46 = vor.u32 %v2647_v44, %v2254_v43  ;;  %v2182_v49 = vld [vmem:[#allocation8 + $0x40] sm:$0xf]  ;;  %v2174_v56 = vld [vmem:[#allocation8 + $0x30] sm:$0xf]  ;;  %v2627_v57 = vld [vmem:[#allocation8 + $0x34] sm:$0xf0] }
  0x3a   :  { %318 = vmatpush.bf16.msra.mxu0 %v2095_v40  ;;  %v2190_v40 = vld [vmem:[#allocation8 + $0x50] sm:$0xf]  ;;  %v2166_v63 = vld [vmem:[#allocation8 + $0x20] sm:$0xf]  ;;  %v2625_v0 = vld [vmem:[#allocation8 + $0x24] sm:$0xf0] }
  0x3b   :  { %367 = vmatpush.bf16.msra.mxu1 %v2099_v41  ;;  %657 = vmatpush.bf16.msra.mxu2 %v2199_v35  ;;  %v2163_v41 = vor.u32 %v2622_v38, %v2160_v39  ;;  %v2191_v45 = vor.u32 %v2631_v42, %v2190_v40  ;;  %v2602_v59 = vld [vmem:[#allocation2 + $0x30] sm:$0xff]  ;;  %v2230_v2 = vld [vmem:[#allocation8 + $0xa0] sm:$0xf]  ;;  %v2620_v5 = vld [vmem:[#allocation8 + $0x4] sm:$0xf] }
  0x3c   :  { %706 = vmatpush.bf16.msra.mxu3 %v2263_v37  ;;  %v2152_v6 = vld [vmem:[#allocation8 + $0x8] sm:$0xf0]  ;;  %v2623_v9 = vld [vmem:[#allocation8 + $0x14] sm:$0xf0]  ;;  %v2636_v14 = vld [vmem:[#allocation8 + $0x84] sm:$0xf] }
  0x3d   :  { %v2155_v7 = vor.u32 %v2620_v5, %v2152_v6  ;;  %v2639_v12 = vld [vmem:[#allocation8 + $0x94] sm:$0xf0]  ;;  %v2150_v16 = vld [vmem:[#allocation8] sm:$0xf]  ;;  %v2637_v20 = vld [vmem:[#allocation8 + $0x84] sm:$0xf0] }
  0x3e   :  { %319 = vmatpush.bf16.msra.mxu0 %v2087_v50  ;;  %v2227_v50 = vor.u32 %v2638_v47, %v2224_v48  ;;  %v2214_v19 = vld [vmem:[#allocation8 + $0x80] sm:$0xf]  ;;  %v2603_v23 = vld [vmem:[#allocation2 + $0x38] sm:$0xff]  ;;  %v178_v24 = vld [vmem:[#allocation7] sm:$0x3] }
  0x3f   :  { %368 = vmatpush.bf16.msra.mxu1 %v2091_v51  ;;  %v2629_v51 = vld [vmem:[#allocation8 + $0x44] sm:$0xf0]  ;;  %658 = vmatpush.bf16.msra.mxu2 %v2191_v45  ;;  %v3052_v27 = vperm.slane %v178_v24, 0  ;;  %v3054_v28 = vperm.slane %v178_v24, 1  ;;  %v2334_v29 = vld [vmem:[#allocation10 + $0x70] sm:$0xf] }
  0x40   :  { %707 = vmatpush.bf16.msra.mxu3 %v2255_v46  ;;  %v2667_v30 = vld [vmem:[#allocation10 + $0x74] sm:$0xf0]  ;;  %v2398_v32 = vld [vmem:[#allocation10 + $0xf0] sm:$0xf]  ;;  %v2666_v45 = vld [vmem:[#allocation10 + $0x74] sm:$0xf] }
  0x41   :  { %320 = vmatmul.bf16.vlgmr.msra.gmra.mxu0 %v2596_v54  ;;  %v2683_v33 = vld [vmem:[#allocation10 + $0xf4] sm:$0xf0]  ;;  %v2336_v46 = vld [vmem:[#allocation10 + $0x78] sm:$0xf0] }
  0x42   :  { %754 = vmatpush.bf16.msrb.mxu0 %v2211_v52  ;;  %369 = vmatmul.bf16.vlgmr.msra.gmra.mxu1 %v2596_v54  ;;  %v2246_v52 = vld [vmem:[#allocation8 + $0xc0] sm:$0xf]  ;;  %v2183_v54 = vor.u32 %v2629_v51, %v2182_v49  ;;  %v2399_v34 = vor.u32 %v2683_v33, %v2398_v32  ;;  %v2339_v48 = vor.u32 %v2666_v45, %v2336_v46  ;;  %v2682_v49 = vld [vmem:[#allocation10 + $0xf4] sm:$0xf]  ;;  %v2661_v46 = vld [vmem:[#allocation10 + $0x44] sm:$0xf0] }
  0x43   :  { %803 = vmatpush.bf16.msrb.mxu1 %v2275_v53  ;;  %v2645_v53 = vld [vmem:[#allocation8 + $0xc4] sm:$0xf0]  ;;  %v2310_v45 = vld [vmem:[#allocation10 + $0x40] sm:$0xf] }
  0x44   :  { %v2247_v55 = vor.u32 %v2645_v53, %v2246_v52  ;;  %659 = vmatpush.bf16.msra.mxu2 %v2183_v54 }
  0x46   :  { %755 = vmatpush.bf16.msrb.mxu0 %v2203_v58  ;;  %708 = vmatpush.bf16.msra.mxu3 %v2247_v55  ;;  %v2238_v58 = vld [vmem:[#allocation8 + $0xb0] sm:$0xf]  ;;  %v2326_v55 = vld [vmem:[#allocation10 + $0x60] sm:$0xf] }
  0x47   :  { %804 = vmatpush.bf16.msrb.mxu1 %v2267_v60  ;;  %v2175_v60 = vor.u32 %v2627_v57, %v2174_v56  ;;  %v2665_v56 = vld [vmem:[#allocation10 + $0x64] sm:$0xf0] }
  0x48   :  { %v2327_v57 = vor.u32 %v2665_v56, %v2326_v55 }
  0x49   :  { %660 = vmatpush.bf16.msra.mxu2 %v2175_v60 }
  0x4a   :  { %756 = vmatpush.bf16.msrb.mxu0 %v2195_v1  ;;  %v2167_v1 = vor.u32 %v2625_v0, %v2166_v63 }
  0x4b   :  { %805 = vmatpush.bf16.msrb.mxu1 %v2259_v3  ;;  %v2641_v3 = vld [vmem:[#allocation8 + $0xa4] sm:$0xf0] }
  0x4d   :  { %661 = vmatpush.bf16.msra.mxu2 %v2167_v1 }
  0x4e   :  { %757 = vmatpush.bf16.msrb.mxu0 %v2187_v8  ;;  %v2158_v8 = vld [vmem:[#allocation8 + $0x10] sm:$0xf] }
  0x4f   :  { %806 = vmatpush.bf16.msrb.mxu1 %v2251_v10  ;;  %v2222_v10 = vld [vmem:[#allocation8 + $0x90] sm:$0xf] }
  0x50   :  { %v2223_v13 = vor.u32 %v2639_v12, %v2222_v10  ;;  %v2392_v12 = vld [vmem:[#allocation10 + $0xe8] sm:$0xf0] }
  0x51   :  { %325 = vmatmul.bf16.gmra.mxu0 %v2597_v61 }
  0x52   :  { %374 = vmatmul.bf16.gmra.mxu1 %v2597_v61  ;;  %758 = vmatpush.bf16.msrb.mxu0 %v2179_v15  ;;  %v2643_v61 = vld [vmem:[#allocation8 + $0xb4] sm:$0xf0]  ;;  %v2216_v15 = vld [vmem:[#allocation8 + $0x88] sm:$0xf0] }
  0x53   :  { %807 = vmatpush.bf16.msrb.mxu1 %v2243_v17  ;;  %v2239_v62 = vor.u32 %v2643_v61, %v2238_v58  ;;  %v2219_v17 = vor.u32 %v2636_v14, %v2216_v15  ;;  %v2390_v58 = vld [vmem:[#allocation10 + $0xe0] sm:$0xf] }
  0x55   :  { %709 = vmatpush.bf16.msra.mxu3 %v2239_v62 }
  0x56   :  { %759 = vmatpush.bf16.msrb.mxu0 %v2171_v22  ;;  %v2215_v22 = vor.u32 %v2637_v20, %v2214_v19  ;;  %v2382_v20 = vld [vmem:[#allocation10 + $0xd0] sm:$0xf] }
  0x57   :  { %808 = vmatpush.bf16.msrb.mxu1 %v2235_v26 }
  0x5a   :  { %760 = vmatpush.bf16.msrb.mxu0 %v2163_v41 }
  0x5b   :  { %809 = vmatpush.bf16.msrb.mxu1 %v2227_v50  ;;  %v2400_v50 = vld [vmem:[#allocation10 + $0xf8] sm:$0xf0] }
  0x5c   :  { %v2403_v52 = vor.u32 %v2682_v49, %v2400_v50  ;;  %v2677_v49 = vld [vmem:[#allocation10 + $0xc4] sm:$0xf0] }
  0x5e   :  { %761 = vmatpush.bf16.msrb.mxu0 %v2155_v7  ;;  %v2664_v7 = vld [vmem:[#allocation10 + $0x64] sm:$0xf] }
  0x5f   :  { %810 = vmatpush.bf16.msrb.mxu1 %v2219_v17  ;;  %v2318_v17 = vld [vmem:[#allocation10 + $0x50] sm:$0xf] }
  0x61   :  { %330 = vmatmul.bf16.gmra.mxu0 %v2598_v4 }
  0x62   :  { %379 = vmatmul.bf16.gmra.mxu1 %v2598_v4  ;;  %v2231_v4 = vor.u32 %v2641_v3, %v2230_v2  ;;  %1196 = vmatpush.bf16.msra.mxu0 %v2339_v48  ;;  %v2374_v48 = vld [vmem:[#allocation10 + $0xc0] sm:$0xf] }
  0x63   :  { %1245 = vmatpush.bf16.msra.mxu1 %v2403_v52  ;;  %v2375_v50 = vor.u32 %v2677_v49, %v2374_v48 }
  0x64   :  { %710 = vmatpush.bf16.msra.mxu3 %v2231_v4 }
  0x68   :  { %711 = vmatpush.bf16.msra.mxu3 %v2223_v13 }
  0x6c   :  { %712 = vmatpush.bf16.msra.mxu3 %v2215_v22 }
  0x70   :  { %1147 = vmatpush.bf16.msrb.mxu3 %v2399_v34 }
  0x71   :  { %335 = vmatmul.bf16.gmra.mxu0 %v2599_v11 }
  0x72   :  { %384 = vmatmul.bf16.gmra.mxu1 %v2599_v11  ;;  %v2159_v11 = vor.u32 %v2623_v9, %v2158_v8  ;;  %v2328_v8 = vld [vmem:[#allocation10 + $0x68] sm:$0xf0] }
  0x73   :  { %v2331_v10 = vor.u32 %v2664_v7, %v2328_v8  ;;  %v2302_v7 = vld [vmem:[#allocation10 + $0x30] sm:$0xf]  ;;  %v2659_v8 = vld [vmem:[#allocation10 + $0x34] sm:$0xf0] }
  0x74   :  { %662 = vmatpush.bf16.msra.mxu2 %v2159_v11  ;;  %v2680_v11 = vld [vmem:[#allocation10 + $0xe4] sm:$0xf] }
  0x75   :  { %v2395_v14 = vor.u32 %v2680_v11, %v2392_v12  ;;  %1197 = vmatpush.bf16.msra.mxu0 %v2331_v10  ;;  %v2366_v10 = vld [vmem:[#allocation10 + $0xb0] sm:$0xf]  ;;  %v2675_v11 = vld [vmem:[#allocation10 + $0xb4] sm:$0xf0] }
  0x76   :  { %v2367_v12 = vor.u32 %v2675_v11, %v2366_v10 }
  0x77   :  { %1246 = vmatpush.bf16.msra.mxu1 %v2395_v14 }
  0x81   :  { %340 = vmatmul.bf16.gmra.mxu0 %v2600_v18 }
  0x82   :  { %389 = vmatmul.bf16.gmra.mxu1 %v2600_v18  ;;  %v2621_v18 = vld [vmem:[#allocation8 + $0x4] sm:$0xf0] }
  0x83   :  { %v2151_v21 = vor.u32 %v2621_v18, %v2150_v16  ;;  %v2663_v18 = vld [vmem:[#allocation10 + $0x54] sm:$0xf0] }
  0x84   :  { %v2319_v19 = vor.u32 %v2663_v18, %v2318_v17 }
  0x85   :  { %663 = vmatpush.bf16.msra.mxu2 %v2151_v21  ;;  %v2679_v21 = vld [vmem:[#allocation10 + $0xd4] sm:$0xf0] }
  0x86   :  { %v2383_v22 = vor.u32 %v2679_v21, %v2382_v20 }
  0x91   :  { %345 = vmatmul.bf16.gmra.mxu0 %v2601_v31 }
  0x92   :  { %394 = vmatmul.bf16.gmra.mxu1 %v2601_v31  ;;  %v2335_v31 = vor.u32 %v2667_v30, %v2334_v29 }
  0x94   :  { %1098 = vmatpush.bf16.msrb.mxu2 %v2335_v31 }
  0x98   :  { %1099 = vmatpush.bf16.msrb.mxu2 %v2327_v57 }
  0x9c   :  { %1100 = vmatpush.bf16.msrb.mxu2 %v2319_v19 }
  0xa1   :  { %350 = vmatmul.bf16.gmra.mxu0 %v2602_v59 }
  0xa2   :  { %399 = vmatmul.bf16.gmra.mxu1 %v2602_v59  ;;  %v2681_v59 = vld [vmem:[#allocation10 + $0xe4] sm:$0xf0] }
  0xa3   :  { %v2391_v60 = vor.u32 %v2681_v59, %v2390_v58 }
  0xa5   :  { %1148 = vmatpush.bf16.msrb.mxu3 %v2391_v60 }
  0xa9   :  { %1149 = vmatpush.bf16.msrb.mxu3 %v2383_v22 }
  0xad   :  { %1150 = vmatpush.bf16.msrb.mxu3 %v2375_v50 }
  0xb1   :  { %355 = vmatmul.bf16.gmra.mxu0 %v2603_v23  ;;  %1151 = vmatpush.bf16.msrb.mxu3 %v2367_v12 }
  0xb2   :  { %404 = vmatmul.bf16.gmra.mxu1 %v2603_v23 }
  0xbe   :  { %v321_v25 = vpop.f32.mrf.mxu0 }
  0xbf   :  { %v370_v26 = vpop.f32.mrf.mxu1  ;;  %v322_v35 = vadd.f32 %v321_v25, %v3052_v27 }
  0xc0   :  { %v371_v36 = vadd.f32 %v370_v26, %v3054_v28 }
  0xc1   :  { %v410_v41 = vmax.f32 %v322_v35, 0.0  ;;  %v2662_v35 = vld [vmem:[#allocation10 + $0x54] sm:$0xf] }
  0xc2   :  { %v411_v43 = vmax.f32 %v371_v36, 0.0  ;;  %v2320_v36 = vld [vmem:[#allocation10 + $0x58] sm:$0xf0] }
  0xc6   :  { %v323_v37 = vpop.f32.mrf.mxu0 }
  0xc7   :  { %v324_v38 = vadd.f32 %v323_v37, %v3052_v27  ;;  %v372_v39 = vpop.f32.mrf.mxu1 }
  0xc8   :  { %v373_v40 = vadd.f32 %v372_v39, %v3054_v28  ;;  %v2678_v39 = vld [vmem:[#allocation10 + $0xd4] sm:$0xf] }
  0xc9   :  { %v412_v42 = vmax.f32 %v324_v38, 0.0  ;;  %v2323_v38 = vor.u32 %v2662_v35, %v2320_v36  ;;  %v2294_v35 = vld [vmem:[#allocation10 + $0x20] sm:$0xf]  ;;  %v2657_v36 = vld [vmem:[#allocation10 + $0x24] sm:$0xf0] }
  0xca   :  { %v413_v44 = vmax.f32 %v373_v40, 0.0  ;;  %v2384_v40 = vld [vmem:[#allocation10 + $0xd8] sm:$0xf0] }
  0xcb   :  { %v442_v47 = vpack.c.bf16 %v412_v42, %v410_v41  ;;  %v2387_v42 = vor.u32 %v2678_v39, %v2384_v40  ;;  %1198 = vmatpush.bf16.msra.mxu0 %v2323_v38  ;;  %v2358_v38 = vld [vmem:[#allocation10 + $0xa0] sm:$0xf]  ;;  %v2673_v39 = vld [vmem:[#allocation10 + $0xa4] sm:$0xf0] }
  0xcc   :  { %v443_v51 = vpack.c.bf16 %v413_v44, %v411_v43  ;;  %v2359_v40 = vor.u32 %v2673_v39, %v2358_v38 }
  0xcd   :  { %664 = vmatmul.bf16.vlgmr.msra.gmra.mxu2 %v442_v47  ;;  %762 = vmatmul.bf16.vlgmr.msrb.gmra.mxu0 %v442_v47  ;;  %v2311_v47 = vor.u32 %v2661_v46, %v2310_v45 }
  0xce   :  { %713 = vmatmul.bf16.vlgmr.msra.gmra.mxu3 %v443_v51  ;;  %811 = vmatmul.bf16.vlgmr.msrb.gmra.mxu1 %v443_v51  ;;  %v326_v53 = vpop.f32.mrf.mxu0 }
  0xcf   :  { %v375_v54 = vpop.f32.mrf.mxu1  ;;  %v327_v61 = vadd.f32 %v326_v53, %v3052_v27  ;;  %1247 = vmatpush.bf16.msra.mxu1 %v2387_v42  ;;  %1101 = vmatpush.bf16.msrb.mxu2 %v2311_v47 }
  0xd0   :  { %v376_v62 = vadd.f32 %v375_v54, %v3054_v28  ;;  %1152 = vmatpush.bf16.msrb.mxu3 %v2359_v40 }
  0xd1   :  { %v414_v3 = vmax.f32 %v327_v61, 0.0  ;;  %v2660_v61 = vld [vmem:[#allocation10 + $0x44] sm:$0xf] }
  0xd2   :  { %v415_v5 = vmax.f32 %v376_v62, 0.0  ;;  %v2312_v62 = vld [vmem:[#allocation10 + $0x48] sm:$0xf0] }
  0xd6   :  { %v328_v63 = vpop.f32.mrf.mxu0 }
  0xd7   :  { %v329_v0 = vadd.f32 %v328_v63, %v3052_v27  ;;  %v377_v1 = vpop.f32.mrf.mxu1 }
  0xd8   :  { %v378_v2 = vadd.f32 %v377_v1, %v3054_v28  ;;  %v2676_v1 = vld [vmem:[#allocation10 + $0xc4] sm:$0xf] }
  0xd9   :  { %v416_v4 = vmax.f32 %v329_v0, 0.0  ;;  %v2315_v0 = vor.u32 %v2660_v61, %v2312_v62  ;;  %v2655_v61 = vld [vmem:[#allocation10 + $0x14] sm:$0xf0]  ;;  %v2350_v62 = vld [vmem:[#allocation10 + $0x90] sm:$0xf] }
  0xda   :  { %v417_v6 = vmax.f32 %v378_v2, 0.0  ;;  %v2376_v2 = vld [vmem:[#allocation10 + $0xc8] sm:$0xf0] }
  0xdb   :  { %v444_v9 = vpack.c.bf16 %v416_v4, %v414_v3  ;;  %v2379_v4 = vor.u32 %v2676_v1, %v2376_v2  ;;  %1199 = vmatpush.bf16.msra.mxu0 %v2315_v0  ;;  %v2671_v1 = vld [vmem:[#allocation10 + $0x94] sm:$0xf0]  ;;  %v2654_v2 = vld [vmem:[#allocation10 + $0x14] sm:$0xf] }
  0xdc   :  { %v445_v13 = vpack.c.bf16 %v417_v6, %v415_v5 }
  0xdd   :  { %669 = vmatmul.bf16.gmra.mxu2 %v444_v9  ;;  %767 = vmatmul.bf16.gmra.mxu0 %v444_v9  ;;  %v2303_v9 = vor.u32 %v2659_v8, %v2302_v7 }
  0xde   :  { %718 = vmatmul.bf16.gmra.mxu3 %v445_v13  ;;  %816 = vmatmul.bf16.gmra.mxu1 %v445_v13  ;;  %v331_v15 = vpop.f32.mrf.mxu0 }
  0xdf   :  { %v380_v16 = vpop.f32.mrf.mxu1  ;;  %v332_v23 = vadd.f32 %v331_v15, %v3052_v27  ;;  %1248 = vmatpush.bf16.msra.mxu1 %v2379_v4  ;;  %1102 = vmatpush.bf16.msrb.mxu2 %v2303_v9  ;;  %v2351_v4 = vor.u32 %v2671_v1, %v2350_v62 }
  0xe0   :  { %v381_v24 = vadd.f32 %v380_v16, %v3054_v28 }
  0xe1   :  { %v418_v31 = vmax.f32 %v332_v23, 0.0  ;;  %v2658_v23 = vld [vmem:[#allocation10 + $0x34] sm:$0xf]  ;;  %1153 = vmatpush.bf16.msrb.mxu3 %v2351_v4  ;;  %v2715_v4 = vld [vmem:[#allocation11 + $0xf4] sm:$0xf0] }
  0xe2   :  { %v419_v33 = vmax.f32 %v381_v24, 0.0  ;;  %v2304_v24 = vld [vmem:[#allocation10 + $0x38] sm:$0xf0] }
  0xe6   :  { %v333_v25 = vpop.f32.mrf.mxu0 }
  0xe7   :  { %v334_v26 = vadd.f32 %v333_v25, %v3052_v27  ;;  %v382_v29 = vpop.f32.mrf.mxu1 }
  0xe8   :  { %v383_v30 = vadd.f32 %v382_v29, %v3054_v28  ;;  %v2674_v29 = vld [vmem:[#allocation10 + $0xb4] sm:$0xf] }
  0xe9   :  { %v420_v32 = vmax.f32 %v334_v26, 0.0  ;;  %v2307_v26 = vor.u32 %v2658_v23, %v2304_v24  ;;  %v2278_v24 = vld [vmem:[#allocation10] sm:$0xf] }
  0xea   :  { %v421_v34 = vmax.f32 %v383_v30, 0.0  ;;  %v2368_v30 = vld [vmem:[#allocation10 + $0xb8] sm:$0xf0] }
  0xeb   :  { %v446_v37 = vpack.c.bf16 %v420_v32, %v418_v31  ;;  %v2371_v32 = vor.u32 %v2674_v29, %v2368_v30  ;;  %1200 = vmatpush.bf16.msra.mxu0 %v2307_v26 }
  0xec   :  { %v447_v41 = vpack.c.bf16 %v421_v34, %v419_v33 }
  0xed   :  { %674 = vmatmul.bf16.gmra.mxu2 %v446_v37  ;;  %772 = vmatmul.bf16.gmra.mxu0 %v446_v37  ;;  %v2295_v37 = vor.u32 %v2657_v36, %v2294_v35 }
  0xee   :  { %723 = vmatmul.bf16.gmra.mxu3 %v447_v41  ;;  %821 = vmatmul.bf16.gmra.mxu1 %v447_v41  ;;  %v336_v43 = vpop.f32.mrf.mxu0 }
  0xef   :  { %v385_v44 = vpop.f32.mrf.mxu1  ;;  %v337_v51 = vadd.f32 %v336_v43, %v3052_v27  ;;  %1249 = vmatpush.bf16.msra.mxu1 %v2371_v32  ;;  %1103 = vmatpush.bf16.msrb.mxu2 %v2295_v37  ;;  %v2669_v32 = vld [vmem:[#allocation10 + $0x84] sm:$0xf0]  ;;  %v2344_v37 = vld [vmem:[#allocation10 + $0x88] sm:$0xf0] }
  0xf0   :  { %v386_v52 = vadd.f32 %v385_v44, %v3054_v28 }
  0xf1   :  { %v422_v57 = vmax.f32 %v337_v51, 0.0  ;;  %v2656_v51 = vld [vmem:[#allocation10 + $0x24] sm:$0xf] }
  0xf2   :  { %v423_v59 = vmax.f32 %v386_v52, 0.0  ;;  %v2296_v52 = vld [vmem:[#allocation10 + $0x28] sm:$0xf0] }
  0xf6   :  { %v338_v53 = vpop.f32.mrf.mxu0 }
  0xf7   :  { %v339_v54 = vadd.f32 %v338_v53, %v3052_v27  ;;  %v387_v55 = vpop.f32.mrf.mxu1 }
  0xf8   :  { %v388_v56 = vadd.f32 %v387_v55, %v3054_v28  ;;  %v2672_v55 = vld [vmem:[#allocation10 + $0xa4] sm:$0xf] }
  0xf9   :  { %v424_v58 = vmax.f32 %v339_v54, 0.0  ;;  %v2299_v54 = vor.u32 %v2656_v51, %v2296_v52 }
  0xfa   :  { %v425_v60 = vmax.f32 %v388_v56, 0.0  ;;  %v2360_v56 = vld [vmem:[#allocation10 + $0xa8] sm:$0xf0] }
  0xfb   :  { %v448_v63 = vpack.c.bf16 %v424_v58, %v422_v57  ;;  %v2363_v58 = vor.u32 %v2672_v55, %v2360_v56  ;;  %1201 = vmatpush.bf16.msra.mxu0 %v2299_v54 }
  0xfc   :  { %v449_v3 = vpack.c.bf16 %v425_v60, %v423_v59  ;;  %v2286_v60 = vld [vmem:[#allocation10 + $0x10] sm:$0xf] }
  0xfd   :  { %679 = vmatmul.bf16.gmra.mxu2 %v448_v63  ;;  %777 = vmatmul.bf16.gmra.mxu0 %v448_v63  ;;  %v2287_v0 = vor.u32 %v2655_v61, %v2286_v60 }
  0xfe   :  { %728 = vmatmul.bf16.gmra.mxu3 %v449_v3  ;;  %826 = vmatmul.bf16.gmra.mxu1 %v449_v3  ;;  %v341_v5 = vpop.f32.mrf.mxu0  ;;  %v2288_v3 = vld [vmem:[#allocation10 + $0x18] sm:$0xf0] }
  0xff   :  { %v390_v6 = vpop.f32.mrf.mxu1  ;;  %v342_v13 = vadd.f32 %v341_v5, %v3052_v27  ;;  %1250 = vmatpush.bf16.msra.mxu1 %v2363_v58  ;;  %v2291_v5 = vor.u32 %v2654_v2, %v2288_v3  ;;  %1104 = vmatpush.bf16.msrb.mxu2 %v2287_v0  ;;  %v2699_v0 = vld [vmem:[#allocation11 + $0x74] sm:$0xf0]  ;;  %v2526_v3 = vld [vmem:[#allocation11 + $0xf0] sm:$0xf] }
 0x100   :  { %v391_v14 = vadd.f32 %v390_v6, %v3054_v28 }
 0x101   :  { %v426_v19 = vmax.f32 %v342_v13, 0.0  ;;  %1202 = vmatpush.bf16.msra.mxu0 %v2291_v5 }
 0x102   :  { %v427_v21 = vmax.f32 %v391_v14, 0.0 }
 0x106   :  { %v343_v15 = vpop.f32.mrf.mxu0 }
 0x107   :  { %v344_v16 = vadd.f32 %v343_v15, %v3052_v27  ;;  %v392_v17 = vpop.f32.mrf.mxu1 }
 0x108   :  { %v393_v18 = vadd.f32 %v392_v17, %v3054_v28 }
 0x109   :  { %v428_v20 = vmax.f32 %v344_v16, 0.0 }
 0x10a   :  { %v429_v22 = vmax.f32 %v393_v18, 0.0 }
 0x10b   :  { %v450_v25 = vpack.c.bf16 %v428_v20, %v426_v19  ;;  %v2670_v20 = vld [vmem:[#allocation10 + $0x94] sm:$0xf] }
 0x10c   :  { %v451_v31 = vpack.c.bf16 %v429_v22, %v427_v21  ;;  %v2352_v21 = vld [vmem:[#allocation10 + $0x98] sm:$0xf0] }
 0x10d   :  { %684 = vmatmul.bf16.gmra.mxu2 %v450_v25  ;;  %782 = vmatmul.bf16.gmra.mxu0 %v450_v25  ;;  %v2355_v22 = vor.u32 %v2670_v20, %v2352_v21  ;;  %v2653_v25 = vld [vmem:[#allocation10 + $0x4] sm:$0xf0]  ;;  %v2714_v21 = vld [vmem:[#allocation11 + $0xf4] sm:$0xf] }
 0x10e   :  { %733 = vmatmul.bf16.gmra.mxu3 %v451_v31  ;;  %831 = vmatmul.bf16.gmra.mxu1 %v451_v31  ;;  %v346_v33 = vpop.f32.mrf.mxu0  ;;  %v2279_v30 = vor.u32 %v2653_v25, %v2278_v24  ;;  %v2342_v31 = vld [vmem:[#allocation10 + $0x80] sm:$0xf] }
 0x10f   :  { %v395_v34 = vpop.f32.mrf.mxu1  ;;  %v347_v41 = vadd.f32 %v346_v33, %v3052_v27  ;;  %1251 = vmatpush.bf16.msra.mxu1 %v2355_v22  ;;  %v2668_v33 = vld [vmem:[#allocation10 + $0x84] sm:$0xf]  ;;  %v2343_v36 = vor.u32 %v2669_v32, %v2342_v31  ;;  %v2528_v22 = vld [vmem:[#allocation11 + $0xf8] sm:$0xf0] }
 0x110   :  { %v396_v42 = vadd.f32 %v395_v34, %v3054_v28  ;;  %1105 = vmatpush.bf16.msrb.mxu2 %v2279_v30  ;;  %v2347_v39 = vor.u32 %v2668_v33, %v2344_v37  ;;  %v2531_v24 = vor.u32 %v2714_v21, %v2528_v22 }
 0x111   :  { %v430_v47 = vmax.f32 %v347_v41, 0.0  ;;  %1154 = vmatpush.bf16.msrb.mxu3 %v2343_v36  ;;  %v2697_v36 = vld [vmem:[#allocation11 + $0x64] sm:$0xf0] }
 0x112   :  { %v431_v49 = vmax.f32 %v396_v42, 0.0 }
 0x113   :  { %1252 = vmatpush.bf16.msra.mxu1 %v2347_v39  ;;  %v2518_v39 = vld [vmem:[#allocation11 + $0xe0] sm:$0xf] }
 0x116   :  { %v348_v43 = vpop.f32.mrf.mxu0 }
 0x117   :  { %v349_v44 = vadd.f32 %v348_v43, %v3052_v27  ;;  %v397_v45 = vpop.f32.mrf.mxu1  ;;  %1687 = vmatpush.bf16.msrb.mxu1 %v2531_v24  ;;  %v2448_v24 = vld [vmem:[#allocation11 + $0x58] sm:$0xf0] }
 0x118   :  { %v398_v46 = vadd.f32 %v397_v45, %v3054_v28 }
 0x119   :  { %v432_v48 = vmax.f32 %v349_v44, 0.0 }
 0x11a   :  { %v433_v50 = vmax.f32 %v398_v46, 0.0  ;;  %v2652_v46 = vld [vmem:[#allocation10 + $0x4] sm:$0xf] }
 0x11b   :  { %v452_v53 = vpack.c.bf16 %v432_v48, %v430_v47  ;;  %v2280_v47 = vld [vmem:[#allocation10 + $0x8] sm:$0xf0] }
 0x11c   :  { %v453_v57 = vpack.c.bf16 %v433_v50, %v431_v49 }
 0x11d   :  { %689 = vmatmul.bf16.gmra.mxu2 %v452_v53  ;;  %787 = vmatmul.bf16.gmra.mxu0 %v452_v53 }
 0x11e   :  { %738 = vmatmul.bf16.gmra.mxu3 %v453_v57  ;;  %836 = vmatmul.bf16.gmra.mxu1 %v453_v57  ;;  %v351_v59 = vpop.f32.mrf.mxu0 }
 0x11f   :  { %v400_v63 = vpop.f32.mrf.mxu1  ;;  %v352_v6 = vadd.f32 %v351_v59, %v3052_v27 }
 0x120   :  { %v401_v7 = vadd.f32 %v400_v63, %v3054_v28  ;;  %v2462_v63 = vld [vmem:[#allocation11 + $0x70] sm:$0xf] }
 0x121   :  { %v434_v12 = vmax.f32 %v352_v6, 0.0  ;;  %v2463_v2 = vor.u32 %v2699_v0, %v2462_v63 }
 0x122   :  { %v435_v14 = vmax.f32 %v401_v7, 0.0 }
 0x123   :  { %1540 = vmatpush.bf16.msra.mxu2 %v2463_v2 }
 0x126   :  { %v353_v8 = vpop.f32.mrf.mxu0 }
 0x127   :  { %v354_v9 = vadd.f32 %v353_v8, %v3052_v27  ;;  %v402_v10 = vpop.f32.mrf.mxu1 }
 0x128   :  { %v403_v11 = vadd.f32 %v402_v10, %v3054_v28 }
 0x129   :  { %v436_v13 = vmax.f32 %v354_v9, 0.0  ;;  %v2527_v9 = vor.u32 %v2715_v4, %v2526_v3 }
 0x12a   :  { %v437_v15 = vmax.f32 %v403_v11, 0.0 }
 0x12b   :  { %v454_v16 = vpack.c.bf16 %v436_v13, %v434_v12  ;;  %1589 = vmatpush.bf16.msra.mxu3 %v2527_v9  ;;  %v2510_v9 = vld [vmem:[#allocation11 + $0xd0] sm:$0xf] }
 0x12c   :  { %v455_v17 = vpack.c.bf16 %v437_v15, %v435_v14 }
 0x12d   :  { %694 = vmatmul.bf16.gmra.mxu2 %v454_v16  ;;  %792 = vmatmul.bf16.gmra.mxu0 %v454_v16 }
 0x12e   :  { %743 = vmatmul.bf16.gmra.mxu3 %v455_v17  ;;  %841 = vmatmul.bf16.gmra.mxu1 %v455_v17  ;;  %v356_v18 = vpop.f32.mrf.mxu0  ;;  %v2698_v17 = vld [vmem:[#allocation11 + $0x74] sm:$0xf] }
 0x12f   :  { %v405_v19 = vpop.f32.mrf.mxu1  ;;  %v357_v23 = vadd.f32 %v356_v18, %v3052_v27  ;;  %v2464_v18 = vld [vmem:[#allocation11 + $0x78] sm:$0xf0] }
 0x130   :  { %v406_v26 = vadd.f32 %v405_v19, %v3054_v28  ;;  %v2467_v20 = vor.u32 %v2698_v17, %v2464_v18 }
 0x131   :  { %v438_v40 = vmax.f32 %v357_v23, 0.0 }
 0x132   :  { %v439_v42 = vmax.f32 %v406_v26, 0.0 }
 0x136   :  { %v358_v29 = vpop.f32.mrf.mxu0 }
 0x137   :  { %v359_v34 = vadd.f32 %v358_v29, %v3052_v27  ;;  %v407_v35 = vpop.f32.mrf.mxu1  ;;  %v2283_v27 = vor.u32 %v2652_v46, %v2280_v47 }
 0x138   :  { %v408_v38 = vadd.f32 %v407_v35, %v3054_v28  ;;  %v490_v28 = vld [vmem:[%s3236_s4] sm:$0x3]  ;;  %v2454_v35 = vld [vmem:[#allocation11 + $0x60] sm:$0xf] }
 0x139   :  { %v440_v41 = vmax.f32 %v359_v34, 0.0  ;;  %1203 = vmatpush.bf16.msra.mxu0 %v2283_v27  ;;  %v3091_v49 = vperm.slane %v490_v28, 1  ;;  %v3094_v53 = vperm.slane %v490_v28, 0 }
 0x13a   :  { %v441_v43 = vmax.f32 %v408_v38, 0.0  ;;  %v2455_v38 = vor.u32 %v2697_v36, %v2454_v35 }
 0x13b   :  { %v456_v44 = vpack.c.bf16 %v440_v41, %v438_v40  ;;  %v2713_v40 = vld [vmem:[#allocation11 + $0xe4] sm:$0xf0] }
 0x13c   :  { %v457_v45 = vpack.c.bf16 %v441_v43, %v439_v42  ;;  %1541 = vmatpush.bf16.msra.mxu2 %v2455_v38 }
 0x13d   :  { %699 = vmatmul.bf16.gmra.mxu2 %v456_v44  ;;  %797 = vmatmul.bf16.gmra.mxu0 %v456_v44 }
 0x13e   :  { %748 = vmatmul.bf16.gmra.mxu3 %v457_v45  ;;  %846 = vmatmul.bf16.gmra.mxu1 %v457_v45  ;;  %v2519_v45 = vor.u32 %v2713_v40, %v2518_v39 }
 0x13f   :  { %1638 = vmatpush.bf16.msrb.mxu0 %v2467_v20 }
 0x140   :  { %1590 = vmatpush.bf16.msra.mxu3 %v2519_v45  ;;  %v2502_v45 = vld [vmem:[#allocation11 + $0xc0] sm:$0xf] }
 0x14a   :  { %v763_v48 = vpop.f32.mrf.mxu0 }
 0x14b   :  { %v812_v50 = vpop.f32.mrf.mxu1  ;;  %v764_v51 = vadd.f32 %v763_v48, %v3091_v49 }
 0x14d   :  { %v813_v56 = vadd.f32 %v812_v50, %v764_v51 }
 0x14f   :  { %v853_v61 = vmax.f32 %v813_v56, 0.0 }
 0x150   :  { %v665_v52 = vpop.f32.mrf.mxu2 }
 0x151   :  { %v714_v54 = vpop.f32.mrf.mxu3  ;;  %v666_v59 = vadd.f32 %v665_v52, %v3094_v53  ;;  %v2696_v52 = vld [vmem:[#allocation11 + $0x64] sm:$0xf] }
 0x152   :  { %v765_v55 = vpop.f32.mrf.mxu0 }
 0x153   :  { %v766_v57 = vadd.f32 %v765_v55, %v3091_v49  ;;  %v814_v58 = vpop.f32.mrf.mxu1  ;;  %v715_v5 = vadd.f32 %v714_v54, %v666_v59  ;;  %v2456_v54 = vld [vmem:[#allocation11 + $0x68] sm:$0xf0] }
 0x154   :  { %v2459_v56 = vor.u32 %v2696_v52, %v2456_v54 }
 0x155   :  { %v815_v60 = vadd.f32 %v814_v58, %v766_v57  ;;  %v852_v13 = vmax.f32 %v715_v5, 0.0  ;;  %v2712_v57 = vld [vmem:[#allocation11 + $0xe4] sm:$0xf]  ;;  %v2520_v58 = vld [vmem:[#allocation11 + $0xe8] sm:$0xf0] }
 0x156   :  { %1639 = vmatpush.bf16.msrb.mxu0 %v2459_v56  ;;  %v2446_v5 = vld [vmem:[#allocation11 + $0x50] sm:$0xf] }
 0x157   :  { %v855_v62 = vmax.f32 %v815_v60, 0.0  ;;  %v2523_v60 = vor.u32 %v2712_v57, %v2520_v58 }
 0x158   :  { %v667_v1 = vpop.f32.mrf.mxu2 }
 0x159   :  { %v668_v6 = vadd.f32 %v667_v1, %v3094_v53  ;;  %v716_v7 = vpop.f32.mrf.mxu3  ;;  %v885_v8 = vpack.c.bf16 %v855_v62, %v853_v61  ;;  %1688 = vmatpush.bf16.msrb.mxu1 %v2523_v60  ;;  %v2440_v60 = vld [vmem:[#allocation11 + $0x48] sm:$0xf0] }
 0x15a   :  { %v768_v10 = vpop.f32.mrf.mxu0 }
 0x15b   :  { %v717_v11 = vadd.f32 %v716_v7, %v668_v6  ;;  %v817_v12 = vpop.f32.mrf.mxu1  ;;  %1155 = vmatmul.bf16.vlgmr.msrb.gmra.mxu3 %v885_v8  ;;  %1253 = vmatmul.bf16.vlgmr.msra.gmra.mxu1 %v885_v8  ;;  %v769_v15 = vadd.f32 %v768_v10, %v3091_v49  ;;  %v2695_v6 = vld [vmem:[#allocation11 + $0x54] sm:$0xf0] }
 0x15c   :  { %v2447_v8 = vor.u32 %v2695_v6, %v2446_v5  ;;  %v2711_v10 = vld [vmem:[#allocation11 + $0xd4] sm:$0xf0] }
 0x15d   :  { %v854_v14 = vmax.f32 %v717_v11, 0.0  ;;  %v818_v26 = vadd.f32 %v817_v12, %v769_v15  ;;  %v2511_v15 = vor.u32 %v2711_v10, %v2510_v9 }
 0x15e   :  { %1542 = vmatpush.bf16.msra.mxu2 %v2447_v8 }
 0x15f   :  { %v884_v16 = vpack.c.bf16 %v854_v14, %v852_v13  ;;  %v857_v33 = vmax.f32 %v818_v26, 0.0  ;;  %1591 = vmatpush.bf16.msra.mxu3 %v2511_v15  ;;  %v2494_v15 = vld [vmem:[#allocation11 + $0xb0] sm:$0xf] }
 0x160   :  { %v670_v19 = vpop.f32.mrf.mxu2 }
 0x161   :  { %v719_v23 = vpop.f32.mrf.mxu3  ;;  %1106 = vmatmul.bf16.vlgmr.msrb.gmra.mxu2 %v884_v16  ;;  %1204 = vmatmul.bf16.vlgmr.msra.gmra.mxu0 %v884_v16  ;;  %v671_v31 = vadd.f32 %v670_v19, %v3094_v53 }
 0x162   :  { %v770_v25 = vpop.f32.mrf.mxu0 }
 0x163   :  { %v771_v29 = vadd.f32 %v770_v25, %v3091_v49  ;;  %v819_v30 = vpop.f32.mrf.mxu1  ;;  %v720_v41 = vadd.f32 %v719_v23, %v671_v31  ;;  %v2694_v23 = vld [vmem:[#allocation11 + $0x54] sm:$0xf] }
 0x164   :  { %v2451_v26 = vor.u32 %v2694_v23, %v2448_v24 }
 0x165   :  { %v820_v32 = vadd.f32 %v819_v30, %v771_v29  ;;  %v856_v28 = vmax.f32 %v720_v41, 0.0  ;;  %v2710_v29 = vld [vmem:[#allocation11 + $0xd4] sm:$0xf]  ;;  %v2512_v30 = vld [vmem:[#allocation11 + $0xd8] sm:$0xf0] }
 0x166   :  { %1640 = vmatpush.bf16.msrb.mxu0 %v2451_v26  ;;  %v2438_v41 = vld [vmem:[#allocation11 + $0x40] sm:$0xf] }
 0x167   :  { %v859_v34 = vmax.f32 %v820_v32, 0.0  ;;  %v2515_v32 = vor.u32 %v2710_v29, %v2512_v30 }
 0x168   :  { %v672_v37 = vpop.f32.mrf.mxu2 }
 0x169   :  { %v673_v42 = vadd.f32 %v672_v37, %v3094_v53  ;;  %v721_v43 = vpop.f32.mrf.mxu3  ;;  %v887_v44 = vpack.c.bf16 %v859_v34, %v857_v33  ;;  %1689 = vmatpush.bf16.msrb.mxu1 %v2515_v32  ;;  %v2432_v32 = vld [vmem:[#allocation11 + $0x38] sm:$0xf0] }
 0x16a   :  { %v773_v46 = vpop.f32.mrf.mxu0 }
 0x16b   :  { %v722_v47 = vadd.f32 %v721_v43, %v673_v42  ;;  %v822_v27 = vpop.f32.mrf.mxu1  ;;  %1160 = vmatmul.bf16.gmra.mxu3 %v887_v44  ;;  %1258 = vmatmul.bf16.gmra.mxu1 %v887_v44  ;;  %v774_v50 = vadd.f32 %v773_v46, %v3091_v49  ;;  %v2693_v42 = vld [vmem:[#allocation11 + $0x44] sm:$0xf0] }
 0x16c   :  { %v2439_v44 = vor.u32 %v2693_v42, %v2438_v41  ;;  %v2709_v46 = vld [vmem:[#allocation11 + $0xc4] sm:$0xf0] }
 0x16d   :  { %v858_v48 = vmax.f32 %v722_v47, 0.0  ;;  %v823_v62 = vadd.f32 %v822_v27, %v774_v50  ;;  %v2503_v50 = vor.u32 %v2709_v46, %v2502_v45 }
 0x16e   :  { %1543 = vmatpush.bf16.msra.mxu2 %v2439_v44 }
 0x16f   :  { %v886_v51 = vpack.c.bf16 %v858_v48, %v856_v28  ;;  %v861_v3 = vmax.f32 %v823_v62, 0.0  ;;  %1592 = vmatpush.bf16.msra.mxu3 %v2503_v50  ;;  %v2486_v50 = vld [vmem:[#allocation11 + $0xa0] sm:$0xf] }
 0x170   :  { %v675_v55 = vpop.f32.mrf.mxu2 }
 0x171   :  { %v724_v59 = vpop.f32.mrf.mxu3  ;;  %1111 = vmatmul.bf16.gmra.mxu2 %v886_v51  ;;  %1209 = vmatmul.bf16.gmra.mxu0 %v886_v51  ;;  %v676_v1 = vadd.f32 %v675_v55, %v3094_v53 }
 0x172   :  { %v775_v61 = vpop.f32.mrf.mxu0 }
 0x173   :  { %v776_v63 = vadd.f32 %v775_v61, %v3091_v49  ;;  %v824_v0 = vpop.f32.mrf.mxu1  ;;  %v725_v11 = vadd.f32 %v724_v59, %v676_v1  ;;  %v2692_v59 = vld [vmem:[#allocation11 + $0x44] sm:$0xf] }
 0x174   :  { %v2443_v62 = vor.u32 %v2692_v59, %v2440_v60 }
 0x175   :  { %v825_v2 = vadd.f32 %v824_v0, %v776_v63  ;;  %v860_v19 = vmax.f32 %v725_v11, 0.0  ;;  %v2708_v63 = vld [vmem:[#allocation11 + $0xc4] sm:$0xf]  ;;  %v2504_v0 = vld [vmem:[#allocation11 + $0xc8] sm:$0xf0] }
 0x176   :  { %1641 = vmatpush.bf16.msrb.mxu0 %v2443_v62  ;;  %v2430_v11 = vld [vmem:[#allocation11 + $0x30] sm:$0xf] }
 0x177   :  { %v863_v4 = vmax.f32 %v825_v2, 0.0  ;;  %v2507_v2 = vor.u32 %v2708_v63, %v2504_v0  ;;  %v2688_v63 = vld [vmem:[#allocation11 + $0x24] sm:$0xf]  ;;  %v2424_v0 = vld [vmem:[#allocation11 + $0x28] sm:$0xf0] }
 0x178   :  { %v677_v7 = vpop.f32.mrf.mxu2 }
 0x179   :  { %v678_v12 = vadd.f32 %v677_v7, %v3094_v53  ;;  %v726_v13 = vpop.f32.mrf.mxu3  ;;  %v889_v14 = vpack.c.bf16 %v863_v4, %v861_v3  ;;  %1690 = vmatpush.bf16.msrb.mxu1 %v2507_v2  ;;  %v2704_v2 = vld [vmem:[#allocation11 + $0xa4] sm:$0xf] }
 0x17a   :  { %v778_v16 = vpop.f32.mrf.mxu0 }
 0x17b   :  { %v727_v17 = vadd.f32 %v726_v13, %v678_v12  ;;  %v827_v18 = vpop.f32.mrf.mxu1  ;;  %1165 = vmatmul.bf16.gmra.mxu3 %v889_v14  ;;  %1263 = vmatmul.bf16.gmra.mxu1 %v889_v14  ;;  %v779_v21 = vadd.f32 %v778_v16, %v3091_v49  ;;  %v2691_v12 = vld [vmem:[#allocation11 + $0x34] sm:$0xf0] }
 0x17c   :  { %v2431_v14 = vor.u32 %v2691_v12, %v2430_v11  ;;  %v2707_v16 = vld [vmem:[#allocation11 + $0xb4] sm:$0xf0]  ;;  %v2478_v11 = vld [vmem:[#allocation11 + $0x90] sm:$0xf] }
 0x17d   :  { %v862_v20 = vmax.f32 %v727_v17, 0.0  ;;  %v828_v34 = vadd.f32 %v827_v18, %v779_v21  ;;  %v2495_v21 = vor.u32 %v2707_v16, %v2494_v15 }
 0x17e   :  { %1544 = vmatpush.bf16.msra.mxu2 %v2431_v14  ;;  %v2703_v14 = vld [vmem:[#allocation11 + $0x94] sm:$0xf0] }
 0x17f   :  { %v888_v22 = vpack.c.bf16 %v862_v20, %v860_v19  ;;  %v865_v39 = vmax.f32 %v828_v34, 0.0  ;;  %1593 = vmatpush.bf16.msra.mxu3 %v2495_v21 }
 0x180   :  { %v680_v25 = vpop.f32.mrf.mxu2 }
 0x181   :  { %v729_v31 = vpop.f32.mrf.mxu3  ;;  %1116 = vmatmul.bf16.gmra.mxu2 %v888_v22  ;;  %1214 = vmatmul.bf16.gmra.mxu0 %v888_v22  ;;  %v681_v37 = vadd.f32 %v680_v25, %v3094_v53 }
 0x182   :  { %v780_v33 = vpop.f32.mrf.mxu0 }
 0x183   :  { %v781_v35 = vadd.f32 %v780_v33, %v3091_v49  ;;  %v829_v36 = vpop.f32.mrf.mxu1  ;;  %v730_v47 = vadd.f32 %v729_v31, %v681_v37  ;;  %v2690_v31 = vld [vmem:[#allocation11 + $0x34] sm:$0xf] }
 0x184   :  { %v2435_v34 = vor.u32 %v2690_v31, %v2432_v32 }
 0x185   :  { %v830_v38 = vadd.f32 %v829_v36, %v781_v35  ;;  %v864_v55 = vmax.f32 %v730_v47, 0.0  ;;  %v2706_v35 = vld [vmem:[#allocation11 + $0xb4] sm:$0xf]  ;;  %v2496_v36 = vld [vmem:[#allocation11 + $0xb8] sm:$0xf0] }
 0x186   :  { %1642 = vmatpush.bf16.msrb.mxu0 %v2435_v34  ;;  %v2422_v47 = vld [vmem:[#allocation11 + $0x20] sm:$0xf] }
 0x187   :  { %v867_v40 = vmax.f32 %v830_v38, 0.0  ;;  %v2499_v38 = vor.u32 %v2706_v35, %v2496_v36 }
 0x188   :  { %v682_v43 = vpop.f32.mrf.mxu2 }
 0x189   :  { %v683_v27 = vadd.f32 %v682_v43, %v3094_v53  ;;  %v731_v28 = vpop.f32.mrf.mxu3  ;;  %v891_v48 = vpack.c.bf16 %v867_v40, %v865_v39  ;;  %1691 = vmatpush.bf16.msrb.mxu1 %v2499_v38 }
 0x18a   :  { %v783_v51 = vpop.f32.mrf.mxu0 }
 0x18b   :  { %v732_v52 = vadd.f32 %v731_v28, %v683_v27  ;;  %v832_v54 = vpop.f32.mrf.mxu1  ;;  %1170 = vmatmul.bf16.gmra.mxu3 %v891_v48  ;;  %1268 = vmatmul.bf16.gmra.mxu1 %v891_v48  ;;  %v784_v57 = vadd.f32 %v783_v51, %v3091_v49  ;;  %v2689_v27 = vld [vmem:[#allocation11 + $0x24] sm:$0xf0] }
 0x18c   :  { %v2423_v48 = vor.u32 %v2689_v27, %v2422_v47  ;;  %v2705_v51 = vld [vmem:[#allocation11 + $0xa4] sm:$0xf0] }
 0x18d   :  { %v866_v56 = vmax.f32 %v732_v52, 0.0  ;;  %v833_v4 = vadd.f32 %v832_v54, %v784_v57  ;;  %v2487_v57 = vor.u32 %v2705_v51, %v2486_v50 }
 0x18e   :  { %1545 = vmatpush.bf16.msra.mxu2 %v2423_v48 }
 0x18f   :  { %v890_v58 = vpack.c.bf16 %v866_v56, %v864_v55  ;;  %v869_v9 = vmax.f32 %v833_v4, 0.0  ;;  %1594 = vmatpush.bf16.msra.mxu3 %v2487_v57  ;;  %v2406_v57 = vld [vmem:[#allocation11] sm:$0xf] }
 0x190   :  { %v685_v61 = vpop.f32.mrf.mxu2 }
 0x191   :  { %v734_v1 = vpop.f32.mrf.mxu3  ;;  %1121 = vmatmul.bf16.gmra.mxu2 %v890_v58  ;;  %1219 = vmatmul.bf16.gmra.mxu0 %v890_v58  ;;  %v686_v7 = vadd.f32 %v685_v61, %v3094_v53 }
 0x192   :  { %v785_v3 = vpop.f32.mrf.mxu0 }
 0x193   :  { %v786_v5 = vadd.f32 %v785_v3, %v3091_v49  ;;  %v834_v6 = vpop.f32.mrf.mxu1  ;;  %v735_v17 = vadd.f32 %v734_v1, %v686_v7  ;;  %v2427_v1 = vor.u32 %v2688_v63, %v2424_v0  ;;  %v2488_v3 = vld [vmem:[#allocation11 + $0xa8] sm:$0xf0] }
 0x195   :  { %v835_v8 = vadd.f32 %v834_v6, %v786_v5  ;;  %v868_v25 = vmax.f32 %v735_v17, 0.0  ;;  %v2491_v6 = vor.u32 %v2704_v2, %v2488_v3  ;;  %1643 = vmatpush.bf16.msrb.mxu0 %v2427_v1  ;;  %v2472_v1 = vld [vmem:[#allocation11 + $0x88] sm:$0xf0] }
 0x197   :  { %v871_v10 = vmax.f32 %v835_v8, 0.0  ;;  %1692 = vmatpush.bf16.msrb.mxu1 %v2491_v6  ;;  %v2408_v6 = vld [vmem:[#allocation11 + $0x8] sm:$0xf0] }
 0x198   :  { %v687_v13 = vpop.f32.mrf.mxu2 }
 0x199   :  { %v688_v18 = vadd.f32 %v687_v13, %v3094_v53  ;;  %v736_v19 = vpop.f32.mrf.mxu3  ;;  %v893_v20 = vpack.c.bf16 %v871_v10, %v869_v9  ;;  %v2414_v9 = vld [vmem:[#allocation11 + $0x10] sm:$0xf]  ;;  %v2687_v10 = vld [vmem:[#allocation11 + $0x14] sm:$0xf0] }
 0x19a   :  { %v788_v22 = vpop.f32.mrf.mxu0  ;;  %v2415_v13 = vor.u32 %v2687_v10, %v2414_v9  ;;  %v932_v9 = vld [vmem:[%s3238_s6] sm:$0x3] }
 0x19b   :  { %v737_v23 = vadd.f32 %v736_v19, %v688_v18  ;;  %v837_v24 = vpop.f32.mrf.mxu1  ;;  %1175 = vmatmul.bf16.gmra.mxu3 %v893_v20  ;;  %1273 = vmatmul.bf16.gmra.mxu1 %v893_v20  ;;  %v789_v29 = vadd.f32 %v788_v22, %v3091_v49  ;;  %v2479_v18 = vor.u32 %v2703_v14, %v2478_v11 }
 0x19c   :  { %1546 = vmatpush.bf16.msra.mxu2 %v2415_v13 }
 0x19d   :  { %v870_v26 = vmax.f32 %v737_v23, 0.0  ;;  %v838_v40 = vadd.f32 %v837_v24, %v789_v29  ;;  %1595 = vmatpush.bf16.msra.mxu3 %v2479_v18  ;;  %v2686_v24 = vld [vmem:[#allocation11 + $0x14] sm:$0xf] }
 0x19f   :  { %v892_v30 = vpack.c.bf16 %v870_v26, %v868_v25  ;;  %v873_v45 = vmax.f32 %v838_v40, 0.0  ;;  %v2416_v25 = vld [vmem:[#allocation11 + $0x18] sm:$0xf0] }
 0x1a0   :  { %v690_v33 = vpop.f32.mrf.mxu2  ;;  %v2419_v32 = vor.u32 %v2686_v24, %v2416_v25 }
 0x1a1   :  { %v739_v37 = vpop.f32.mrf.mxu3  ;;  %1126 = vmatmul.bf16.gmra.mxu2 %v892_v30  ;;  %1224 = vmatmul.bf16.gmra.mxu0 %v892_v30  ;;  %v691_v43 = vadd.f32 %v690_v33, %v3094_v53 }
 0x1a2   :  { %v790_v39 = vpop.f32.mrf.mxu0  ;;  %1644 = vmatpush.bf16.msrb.mxu0 %v2419_v32 }
 0x1a3   :  { %v791_v41 = vadd.f32 %v790_v39, %v3091_v49  ;;  %v839_v42 = vpop.f32.mrf.mxu1  ;;  %v740_v52 = vadd.f32 %v739_v37, %v691_v43 }
 0x1a5   :  { %v840_v44 = vadd.f32 %v839_v42, %v791_v41  ;;  %v872_v61 = vmax.f32 %v740_v52, 0.0 }
 0x1a7   :  { %v875_v46 = vmax.f32 %v840_v44, 0.0 }
 0x1a8   :  { %v692_v28 = vpop.f32.mrf.mxu2 }
 0x1a9   :  { %v693_v54 = vadd.f32 %v692_v28, %v3094_v53  ;;  %v741_v55 = vpop.f32.mrf.mxu3  ;;  %v895_v56 = vpack.c.bf16 %v875_v46, %v873_v45  ;;  %v2702_v45 = vld [vmem:[#allocation11 + $0x94] sm:$0xf]  ;;  %v2480_v46 = vld [vmem:[#allocation11 + $0x98] sm:$0xf0] }
 0x1aa   :  { %v793_v58 = vpop.f32.mrf.mxu0  ;;  %v2483_v27 = vor.u32 %v2702_v45, %v2480_v46 }
 0x1ab   :  { %v742_v59 = vadd.f32 %v741_v55, %v693_v54  ;;  %v842_v60 = vpop.f32.mrf.mxu1  ;;  %1180 = vmatmul.bf16.gmra.mxu3 %v895_v56  ;;  %1278 = vmatmul.bf16.gmra.mxu1 %v895_v56  ;;  %v794_v4 = vadd.f32 %v793_v58, %v3091_v49  ;;  %v2685_v58 = vld [vmem:[#allocation11 + $0x4] sm:$0xf0] }
 0x1ac   :  { %1693 = vmatpush.bf16.msrb.mxu1 %v2483_v27 }
 0x1ad   :  { %v874_v62 = vmax.f32 %v742_v59, 0.0  ;;  %v843_v15 = vadd.f32 %v842_v60, %v794_v4  ;;  %v2407_v60 = vor.u32 %v2685_v58, %v2406_v57 }
 0x1af   :  { %v894_v5 = vpack.c.bf16 %v874_v62, %v872_v61  ;;  %v877_v21 = vmax.f32 %v843_v15, 0.0  ;;  %v2701_v61 = vld [vmem:[#allocation11 + $0x84] sm:$0xf0]  ;;  %v2700_v62 = vld [vmem:[#allocation11 + $0x84] sm:$0xf]  ;;  %1547 = vmatpush.bf16.msra.mxu2 %v2407_v60 }
 0x1b0   :  { %v695_v7 = vpop.f32.mrf.mxu2  ;;  %v2475_v2 = vor.u32 %v2700_v62, %v2472_v1 }
 0x1b1   :  { %v744_v8 = vpop.f32.mrf.mxu3  ;;  %1131 = vmatmul.bf16.gmra.mxu2 %v894_v5  ;;  %1229 = vmatmul.bf16.gmra.mxu0 %v894_v5  ;;  %v696_v19 = vadd.f32 %v695_v7, %v3094_v53  ;;  %v2684_v5 = vld [vmem:[#allocation11 + $0x4] sm:$0xf] }
 0x1b2   :  { %v795_v12 = vpop.f32.mrf.mxu0  ;;  %1694 = vmatpush.bf16.msrb.mxu1 %v2475_v2  ;;  %v2411_v7 = vor.u32 %v2684_v5, %v2408_v6 }
 0x1b3   :  { %v796_v16 = vadd.f32 %v795_v12, %v3091_v49  ;;  %v844_v17 = vpop.f32.mrf.mxu1  ;;  %v745_v26 = vadd.f32 %v744_v8, %v696_v19  ;;  %v3130_v12 = vperm.slane %v932_v9, 1 }
 0x1b4   :  { %1645 = vmatpush.bf16.msrb.mxu0 %v2411_v7 }
 0x1b5   :  { %v845_v20 = vadd.f32 %v844_v17, %v796_v16  ;;  %v876_v36 = vmax.f32 %v745_v26, 0.0  ;;  %v3133_v16 = vperm.slane %v932_v9, 0  ;;  %v2723_v26 = vld [vmem:[#allocation13 + $0x38] sm:$0xff] }
 0x1b6   :  { %1916 = vmatpush.bf16.msrb.mxu2 %v2723_v26 }
 0x1b7   :  { %v879_v22 = vmax.f32 %v845_v20, 0.0 }
 0x1b8   :  { %v697_v23 = vpop.f32.mrf.mxu2 }
 0x1b9   :  { %v698_v29 = vadd.f32 %v697_v23, %v3094_v53  ;;  %v746_v30 = vpop.f32.mrf.mxu3  ;;  %v897_v31 = vpack.c.bf16 %v879_v22, %v877_v21 }
 0x1ba   :  { %v798_v33 = vpop.f32.mrf.mxu0 }
 0x1bb   :  { %v747_v34 = vadd.f32 %v746_v30, %v698_v29  ;;  %v847_v35 = vpop.f32.mrf.mxu1  ;;  %1185 = vmatmul.bf16.gmra.mxu3 %v897_v31  ;;  %1283 = vmatmul.bf16.gmra.mxu1 %v897_v31  ;;  %v799_v38 = vadd.f32 %v798_v33, %v3091_v49  ;;  %v2731_v29 = vld [vmem:[#allocation13 + $0x78] sm:$0xff] }
 0x1bd   :  { %v878_v37 = vmax.f32 %v747_v34, 0.0  ;;  %v848_v43 = vadd.f32 %v847_v35, %v799_v38 }
 0x1bf   :  { %v896_v39 = vpack.c.bf16 %v878_v37, %v876_v36  ;;  %v881_v50 = vmax.f32 %v848_v43, 0.0 }
 0x1c0   :  { %v700_v40 = vpop.f32.mrf.mxu2 }
 0x1c1   :  { %v749_v41 = vpop.f32.mrf.mxu3  ;;  %1136 = vmatmul.bf16.gmra.mxu2 %v896_v39  ;;  %1234 = vmatmul.bf16.gmra.mxu0 %v896_v39  ;;  %v701_v28 = vadd.f32 %v700_v40, %v3094_v53 }
 0x1c2   :  { %v800_v42 = vpop.f32.mrf.mxu0 }
 0x1c3   :  { %v801_v44 = vadd.f32 %v800_v42, %v3091_v49  ;;  %v849_v47 = vpop.f32.mrf.mxu1  ;;  %v750_v54 = vadd.f32 %v749_v41, %v701_v28  ;;  %v2470_v49 = vld [vmem:[#allocation11 + $0x80] sm:$0xf] }
 0x1c4   :  { %v2471_v0 = vor.u32 %v2701_v61, %v2470_v49 }
 0x1c5   :  { %v850_v48 = vadd.f32 %v849_v47, %v801_v44  ;;  %v880_v3 = vmax.f32 %v750_v54, 0.0 }
 0x1c6   :  { %1596 = vmatpush.bf16.msra.mxu3 %v2471_v0 }
 0x1c7   :  { %v883_v51 = vmax.f32 %v850_v48, 0.0 }
 0x1c8   :  { %v702_v52 = vpop.f32.mrf.mxu2 }
 0x1c9   :  { %v703_v55 = vadd.f32 %v702_v52, %v3094_v53  ;;  %v899_v56 = vpack.c.bf16 %v883_v51, %v881_v50  ;;  %v751_v59 = vpop.f32.mrf.mxu3  ;;  %v2722_v51 = vld [vmem:[#allocation13 + $0x30] sm:$0xff] }
 0x1ca   :  { %1965 = vmatpush.bf16.msrb.mxu3 %v2731_v29  ;;  %v2730_v52 = vld [vmem:[#allocation13 + $0x70] sm:$0xff]  ;;  %1917 = vmatpush.bf16.msrb.mxu2 %v2722_v51 }
 0x1cb   :  { %v752_v63 = vadd.f32 %v751_v59, %v703_v55  ;;  %1190 = vmatmul.bf16.gmra.mxu3 %v899_v56  ;;  %1288 = vmatmul.bf16.gmra.mxu1 %v899_v56 }
 0x1cd   :  { %v882_v4 = vmax.f32 %v752_v63, 0.0 }
 0x1ce   :  { %1966 = vmatpush.bf16.msrb.mxu3 %v2730_v52 }
 0x1cf   :  { %v898_v53 = vpack.c.bf16 %v882_v4, %v880_v3 }
 0x1d1   :  { %1141 = vmatmul.bf16.gmra.mxu2 %v898_v53  ;;  %1239 = vmatmul.bf16.gmra.mxu0 %v898_v53 }
 0x1d8   :  { %v1254_v8 = vpop.f32.mrf.mxu1 }
 0x1de   :  { %v1156_v10 = vpop.f32.mrf.mxu3  ;;  %v1205_v11 = vpop.f32.mrf.mxu0 }
 0x1df   :  { %v1206_v14 = vadd.f32 %v1205_v11, %v3130_v12  ;;  %v2729_v11 = vld [vmem:[#allocation13 + $0x68] sm:$0xff] }
 0x1e0   :  { %v1256_v13 = vpop.f32.mrf.mxu1  ;;  %1967 = vmatpush.bf16.msrb.mxu3 %v2729_v11 }
 0x1e1   :  { %v1255_v19 = vadd.f32 %v1254_v8, %v1206_v14 }
 0x1e3   :  { %v1295_v24 = vmax.f32 %v1255_v19, 0.0 }
 0x1e4   :  { %v1107_v15 = vpop.f32.mrf.mxu2 }
 0x1e5   :  { %v1108_v22 = vadd.f32 %v1107_v15, %v3133_v16 }
 0x1e6   :  { %v1158_v17 = vpop.f32.mrf.mxu3  ;;  %v1207_v18 = vpop.f32.mrf.mxu0 }
 0x1e7   :  { %v1208_v20 = vadd.f32 %v1207_v18, %v3130_v12  ;;  %v1157_v31 = vadd.f32 %v1156_v10, %v1108_v22  ;;  %v2721_v10 = vld [vmem:[#allocation13 + $0x28] sm:$0xff] }
 0x1e8   :  { %v1259_v21 = vpop.f32.mrf.mxu1  ;;  %1918 = vmatpush.bf16.msrb.mxu2 %v2721_v10 }
 0x1e9   :  { %v1257_v23 = vadd.f32 %v1256_v13, %v1208_v20  ;;  %v1294_v38 = vmax.f32 %v1157_v31, 0.0 }
 0x1eb   :  { %v1297_v25 = vmax.f32 %v1257_v23, 0.0 }
 0x1ec   :  { %v1109_v30 = vpop.f32.mrf.mxu2 }
 0x1ed   :  { %v1327_v32 = vpack.c.bf16 %v1297_v25, %v1295_v24  ;;  %v1110_v33 = vadd.f32 %v1109_v30, %v3133_v16 }
 0x1ee   :  { %v1161_v34 = vpop.f32.mrf.mxu3  ;;  %v1210_v35 = vpop.f32.mrf.mxu0 }
 0x1ef   :  { %v1159_v36 = vadd.f32 %v1158_v17, %v1110_v33  ;;  %1597 = vmatmul.bf16.vlgmr.msra.gmra.mxu3 %v1327_v32  ;;  %1695 = vmatmul.bf16.vlgmr.msrb.gmra.mxu1 %v1327_v32  ;;  %v1211_v41 = vadd.f32 %v1210_v35, %v3130_v12 }
 0x1f0   :  { %v1261_v37 = vpop.f32.mrf.mxu1 }
 0x1f1   :  { %v1296_v39 = vmax.f32 %v1159_v36, 0.0  ;;  %v1260_v45 = vadd.f32 %v1259_v21, %v1211_v41 }
 0x1f3   :  { %v1326_v40 = vpack.c.bf16 %v1296_v39, %v1294_v38  ;;  %v1299_v48 = vmax.f32 %v1260_v45, 0.0  ;;  %v2720_v38 = vld [vmem:[#allocation13 + $0x20] sm:$0xff] }
 0x1f4   :  { %v1112_v42 = vpop.f32.mrf.mxu2  ;;  %v2728_v39 = vld [vmem:[#allocation13 + $0x60] sm:$0xff]  ;;  %1919 = vmatpush.bf16.msrb.mxu2 %v2720_v38 }
 0x1f5   :  { %1548 = vmatmul.bf16.vlgmr.msra.gmra.mxu2 %v1326_v40  ;;  %1646 = vmatmul.bf16.vlgmr.msrb.gmra.mxu0 %v1326_v40  ;;  %v1113_v27 = vadd.f32 %v1112_v42, %v3133_v16 }
 0x1f6   :  { %v1163_v43 = vpop.f32.mrf.mxu3  ;;  %v1212_v44 = vpop.f32.mrf.mxu0  ;;  %1968 = vmatpush.bf16.msrb.mxu3 %v2728_v39  ;;  %v2717_v39 = vld [vmem:[#allocation13 + $0x8] sm:$0xff] }
 0x1f7   :  { %v1213_v46 = vadd.f32 %v1212_v44, %v3130_v12  ;;  %v1162_v55 = vadd.f32 %v1161_v34, %v1113_v27 }
 0x1f8   :  { %v1264_v47 = vpop.f32.mrf.mxu1 }
 0x1f9   :  { %v1262_v28 = vadd.f32 %v1261_v37, %v1213_v46  ;;  %v1298_v61 = vmax.f32 %v1162_v55, 0.0 }
 0x1fb   :  { %v1301_v50 = vmax.f32 %v1262_v28, 0.0 }
 0x1fc   :  { %v1114_v54 = vpop.f32.mrf.mxu2 }
 0x1fd   :  { %v1115_v56 = vadd.f32 %v1114_v54, %v3133_v16  ;;  %v1329_v57 = vpack.c.bf16 %v1301_v50, %v1299_v48 }
 0x1fe   :  { %v1166_v58 = vpop.f32.mrf.mxu3  ;;  %v1215_v59 = vpop.f32.mrf.mxu0 }
 0x1ff   :  { %v1164_v60 = vadd.f32 %v1163_v43, %v1115_v56  ;;  %1602 = vmatmul.bf16.gmra.mxu3 %v1329_v57  ;;  %1700 = vmatmul.bf16.gmra.mxu1 %v1329_v57  ;;  %v1216_v63 = vadd.f32 %v1215_v59, %v3130_v12 }
 0x200   :  { %v1266_v49 = vpop.f32.mrf.mxu1 }
 0x201   :  { %v1300_v62 = vmax.f32 %v1164_v60, 0.0  ;;  %v1265_v4 = vadd.f32 %v1264_v47, %v1216_v63 }
 0x203   :  { %v1328_v0 = vpack.c.bf16 %v1300_v62, %v1298_v61  ;;  %v1303_v8 = vmax.f32 %v1265_v4, 0.0  ;;  %v2719_v61 = vld [vmem:[#allocation13 + $0x18] sm:$0xff] }
 0x204   :  { %v1117_v1 = vpop.f32.mrf.mxu2  ;;  %v2727_v62 = vld [vmem:[#allocation13 + $0x58] sm:$0xff]  ;;  %1920 = vmatpush.bf16.msrb.mxu2 %v2719_v61 }
 0x205   :  { %1553 = vmatmul.bf16.gmra.mxu2 %v1328_v0  ;;  %1651 = vmatmul.bf16.gmra.mxu0 %v1328_v0  ;;  %v1118_v6 = vadd.f32 %v1117_v1, %v3133_v16 }
 0x206   :  { %v1168_v2 = vpop.f32.mrf.mxu3  ;;  %v1217_v3 = vpop.f32.mrf.mxu0  ;;  %1969 = vmatpush.bf16.msrb.mxu3 %v2727_v62 }
 0x207   :  { %v1218_v53 = vadd.f32 %v1217_v3, %v3130_v12  ;;  %v1167_v14 = vadd.f32 %v1166_v58, %v1118_v6 }
 0x208   :  { %v1269_v5 = vpop.f32.mrf.mxu1 }
 0x209   :  { %v1267_v7 = vadd.f32 %v1266_v49, %v1218_v53  ;;  %v1302_v22 = vmax.f32 %v1167_v14, 0.0 }
 0x20b   :  { %v1305_v9 = vmax.f32 %v1267_v7, 0.0 }
 0x20c   :  { %v1119_v13 = vpop.f32.mrf.mxu2 }
 0x20d   :  { %v1120_v15 = vadd.f32 %v1119_v13, %v3133_v16  ;;  %v1331_v17 = vpack.c.bf16 %v1305_v9, %v1303_v8 }
 0x20e   :  { %v1171_v18 = vpop.f32.mrf.mxu3  ;;  %v1220_v19 = vpop.f32.mrf.mxu0 }
 0x20f   :  { %v1169_v20 = vadd.f32 %v1168_v2, %v1120_v15  ;;  %1607 = vmatmul.bf16.gmra.mxu3 %v1331_v17  ;;  %1705 = vmatmul.bf16.gmra.mxu1 %v1331_v17  ;;  %v1221_v24 = vadd.f32 %v1220_v19, %v3130_v12 }
 0x210   :  { %v1271_v21 = vpop.f32.mrf.mxu1 }
 0x211   :  { %v1304_v23 = vmax.f32 %v1169_v20, 0.0  ;;  %v1270_v31 = vadd.f32 %v1269_v5, %v1221_v24 }
 0x213   :  { %v1330_v25 = vpack.c.bf16 %v1304_v23, %v1302_v22  ;;  %v1307_v36 = vmax.f32 %v1270_v31, 0.0  ;;  %v2718_v22 = vld [vmem:[#allocation13 + $0x10] sm:$0xff] }
 0x214   :  { %v1122_v26 = vpop.f32.mrf.mxu2  ;;  %v2726_v23 = vld [vmem:[#allocation13 + $0x50] sm:$0xff]  ;;  %1921 = vmatpush.bf16.msrb.mxu2 %v2718_v22 }
 0x215   :  { %1558 = vmatmul.bf16.gmra.mxu2 %v1330_v25  ;;  %1656 = vmatmul.bf16.gmra.mxu0 %v1330_v25  ;;  %v1123_v34 = vadd.f32 %v1122_v26, %v3133_v16 }
 0x216   :  { %v1173_v29 = vpop.f32.mrf.mxu3  ;;  %v1222_v30 = vpop.f32.mrf.mxu0  ;;  %1970 = vmatpush.bf16.msrb.mxu3 %v2726_v23 }
 0x217   :  { %v1223_v32 = vadd.f32 %v1222_v30, %v3130_v12  ;;  %v1172_v41 = vadd.f32 %v1171_v18, %v1123_v34 }
 0x218   :  { %v1274_v33 = vpop.f32.mrf.mxu1  ;;  %1922 = vmatpush.bf16.msrb.mxu2 %v2717_v39 }
 0x219   :  { %v1272_v35 = vadd.f32 %v1271_v21, %v1223_v32  ;;  %v1306_v27 = vmax.f32 %v1172_v41, 0.0 }
 0x21b   :  { %v1309_v37 = vmax.f32 %v1272_v35, 0.0 }
 0x21c   :  { %v1124_v40 = vpop.f32.mrf.mxu2 }
 0x21d   :  { %v1125_v42 = vadd.f32 %v1124_v40, %v3133_v16  ;;  %v1333_v43 = vpack.c.bf16 %v1309_v37, %v1307_v36  ;;  %v2725_v40 = vld [vmem:[#allocation13 + $0x48] sm:$0xff] }
 0x21e   :  { %v1176_v44 = vpop.f32.mrf.mxu3  ;;  %v1225_v45 = vpop.f32.mrf.mxu0  ;;  %1971 = vmatpush.bf16.msrb.mxu3 %v2725_v40 }
 0x21f   :  { %v1174_v46 = vadd.f32 %v1173_v29, %v1125_v42  ;;  %1612 = vmatmul.bf16.gmra.mxu3 %v1333_v43  ;;  %1710 = vmatmul.bf16.gmra.mxu1 %v1333_v43  ;;  %v1226_v48 = vadd.f32 %v1225_v45, %v3130_v12 }
 0x220   :  { %v1276_v47 = vpop.f32.mrf.mxu1 }
 0x221   :  { %v1308_v28 = vmax.f32 %v1174_v46, 0.0  ;;  %v1275_v55 = vadd.f32 %v1274_v33, %v1226_v48 }
 0x223   :  { %v1332_v50 = vpack.c.bf16 %v1308_v28, %v1306_v27  ;;  %v1311_v60 = vmax.f32 %v1275_v55, 0.0 }
 0x224   :  { %v1127_v51 = vpop.f32.mrf.mxu2 }
 0x225   :  { %1563 = vmatmul.bf16.gmra.mxu2 %v1332_v50  ;;  %1661 = vmatmul.bf16.gmra.mxu0 %v1332_v50  ;;  %v1128_v58 = vadd.f32 %v1127_v51, %v3133_v16 }
 0x226   :  { %v1178_v52 = vpop.f32.mrf.mxu3  ;;  %v1227_v54 = vpop.f32.mrf.mxu0 }
 0x227   :  { %v1228_v56 = vadd.f32 %v1227_v54, %v3130_v12  ;;  %v1177_v0 = vadd.f32 %v1176_v44, %v1128_v58 }
 0x228   :  { %v1279_v57 = vpop.f32.mrf.mxu1 }
 0x229   :  { %v1277_v59 = vadd.f32 %v1276_v47, %v1228_v56  ;;  %v1310_v6 = vmax.f32 %v1177_v0, 0.0 }
 0x22b   :  { %v1313_v49 = vmax.f32 %v1277_v59, 0.0 }
 0x22c   :  { %v1129_v63 = vpop.f32.mrf.mxu2 }
 0x22d   :  { %v1130_v1 = vadd.f32 %v1129_v63, %v3133_v16  ;;  %v1335_v2 = vpack.c.bf16 %v1313_v49, %v1311_v60 }
 0x22e   :  { %v1181_v3 = vpop.f32.mrf.mxu3  ;;  %v1230_v4 = vpop.f32.mrf.mxu0 }
 0x22f   :  { %v1179_v53 = vadd.f32 %v1178_v52, %v1130_v1  ;;  %1617 = vmatmul.bf16.gmra.mxu3 %v1335_v2  ;;  %1715 = vmatmul.bf16.gmra.mxu1 %v1335_v2  ;;  %v1231_v8 = vadd.f32 %v1230_v4, %v3130_v12 }
 0x230   :  { %v1281_v5 = vpop.f32.mrf.mxu1 }
 0x231   :  { %v1312_v7 = vmax.f32 %v1179_v53, 0.0  ;;  %v1280_v14 = vadd.f32 %v1279_v57, %v1231_v8  ;;  %v2716_v8 = vld [vmem:[#allocation13] sm:$0xff] }
 0x232   :  { %1923 = vmatpush.bf16.msrb.mxu2 %v2716_v8 }
 0x233   :  { %v1334_v9 = vpack.c.bf16 %v1312_v7, %v1310_v6  ;;  %v1315_v20 = vmax.f32 %v1280_v14, 0.0 }
 0x234   :  { %v1132_v10 = vpop.f32.mrf.mxu2 }
 0x235   :  { %1568 = vmatmul.bf16.gmra.mxu2 %v1334_v9  ;;  %1666 = vmatmul.bf16.gmra.mxu0 %v1334_v9  ;;  %v1133_v17 = vadd.f32 %v1132_v10, %v3133_v16 }
 0x236   :  { %v1183_v11 = vpop.f32.mrf.mxu3  ;;  %v1232_v13 = vpop.f32.mrf.mxu0 }
 0x237   :  { %v1233_v15 = vadd.f32 %v1232_v13, %v3130_v12  ;;  %v1182_v25 = vadd.f32 %v1181_v3, %v1133_v17  ;;  %v1374_v17 = vld [vmem:[%s3240_s8] sm:$0x3] }
 0x238   :  { %v1284_v19 = vpop.f32.mrf.mxu1  ;;  %v3172_v23 = vperm.slane %v1374_v17, 0 }
 0x239   :  { %v1282_v18 = vadd.f32 %v1281_v5, %v1233_v15  ;;  %v1314_v33 = vmax.f32 %v1182_v25, 0.0 }
 0x23b   :  { %v1317_v21 = vmax.f32 %v1282_v18, 0.0 }
 0x23c   :  { %v1134_v24 = vpop.f32.mrf.mxu2 }
 0x23d   :  { %v1135_v26 = vadd.f32 %v1134_v24, %v3133_v16  ;;  %v1337_v29 = vpack.c.bf16 %v1317_v21, %v1315_v20 }
 0x23e   :  { %v1235_v30 = vpop.f32.mrf.mxu0  ;;  %v1186_v32 = vpop.f32.mrf.mxu3 }
 0x23f   :  { %v1184_v31 = vadd.f32 %v1183_v11, %v1135_v26  ;;  %1622 = vmatmul.bf16.gmra.mxu3 %v1337_v29  ;;  %1720 = vmatmul.bf16.gmra.mxu1 %v1337_v29  ;;  %v1236_v35 = vadd.f32 %v1235_v30, %v3130_v12  ;;  %v2724_v11 = vld [vmem:[#allocation13 + $0x40] sm:$0xff] }
 0x240   :  { %v1286_v37 = vpop.f32.mrf.mxu1  ;;  %1972 = vmatpush.bf16.msrb.mxu3 %v2724_v11 }
 0x241   :  { %v1316_v34 = vmax.f32 %v1184_v31, 0.0  ;;  %v1285_v42 = vadd.f32 %v1284_v19, %v1236_v35  ;;  %v3169_v19 = vperm.slane %v1374_v17, 1 }
 0x243   :  { %v1336_v36 = vpack.c.bf16 %v1316_v34, %v1314_v33  ;;  %v1319_v47 = vmax.f32 %v1285_v42, 0.0 }
 0x244   :  { %v1137_v38 = vpop.f32.mrf.mxu2 }
 0x245   :  { %1573 = vmatmul.bf16.gmra.mxu2 %v1336_v36  ;;  %1671 = vmatmul.bf16.gmra.mxu0 %v1336_v36  ;;  %v1138_v44 = vadd.f32 %v1137_v38, %v3133_v16 }
 0x246   :  { %v1237_v41 = vpop.f32.mrf.mxu0  ;;  %v1188_v46 = vpop.f32.mrf.mxu3 }
 0x247   :  { %v1238_v43 = vadd.f32 %v1237_v41, %v3130_v12  ;;  %v1187_v48 = vadd.f32 %v1186_v32, %v1138_v44 }
 0x248   :  { %v1289_v52 = vpop.f32.mrf.mxu1 }
 0x249   :  { %v1287_v45 = vadd.f32 %v1286_v37, %v1238_v43  ;;  %v1318_v56 = vmax.f32 %v1187_v48, 0.0 }
 0x24b   :  { %v1321_v27 = vmax.f32 %v1287_v45, 0.0 }
 0x24c   :  { %v1139_v28 = vpop.f32.mrf.mxu2 }
 0x24d   :  { %v1140_v50 = vadd.f32 %v1139_v28, %v3133_v16  ;;  %v1339_v51 = vpack.c.bf16 %v1321_v27, %v1319_v47 }
 0x24e   :  { %v1240_v54 = vpop.f32.mrf.mxu0  ;;  %v1191_v60 = vpop.f32.mrf.mxu3 }
 0x24f   :  { %v1189_v55 = vadd.f32 %v1188_v46, %v1140_v50  ;;  %1627 = vmatmul.bf16.gmra.mxu3 %v1339_v51  ;;  %1725 = vmatmul.bf16.gmra.mxu1 %v1339_v51  ;;  %v1241_v58 = vadd.f32 %v1240_v54, %v3130_v12 }
 0x250   :  { %v1291_v0 = vpop.f32.mrf.mxu1 }
 0x251   :  { %v1320_v57 = vmax.f32 %v1189_v55, 0.0  ;;  %v1290_v62 = vadd.f32 %v1289_v52, %v1241_v58 }
 0x253   :  { %v1338_v59 = vpack.c.bf16 %v1320_v57, %v1318_v56  ;;  %v1323_v3 = vmax.f32 %v1290_v62, 0.0 }
 0x254   :  { %v1142_v49 = vpop.f32.mrf.mxu2 }
 0x255   :  { %1578 = vmatmul.bf16.gmra.mxu2 %v1338_v59  ;;  %1676 = vmatmul.bf16.gmra.mxu0 %v1338_v59  ;;  %v1143_v1 = vadd.f32 %v1142_v49, %v3133_v16 }
 0x256   :  { %v1242_v61 = vpop.f32.mrf.mxu0  ;;  %v1193_v9 = vpop.f32.mrf.mxu3 }
 0x257   :  { %v1243_v63 = vadd.f32 %v1242_v61, %v3130_v12  ;;  %v1192_v5 = vadd.f32 %v1191_v60, %v1143_v1 }
 0x259   :  { %v1292_v2 = vadd.f32 %v1291_v0, %v1243_v63  ;;  %v1322_v13 = vmax.f32 %v1192_v5, 0.0 }
 0x25b   :  { %v1325_v4 = vmax.f32 %v1292_v2, 0.0 }
 0x25c   :  { %v1144_v53 = vpop.f32.mrf.mxu2 }
 0x25d   :  { %v1145_v6 = vadd.f32 %v1144_v53, %v3133_v16  ;;  %v1341_v7 = vpack.c.bf16 %v1325_v4, %v1323_v3 }
 0x25f   :  { %v1194_v10 = vadd.f32 %v1193_v9, %v1145_v6  ;;  %1632 = vmatmul.bf16.gmra.mxu3 %v1341_v7  ;;  %1730 = vmatmul.bf16.gmra.mxu1 %v1341_v7 }
 0x261   :  { %v1324_v12 = vmax.f32 %v1194_v10, 0.0 }
 0x263   :  { %v1340_v14 = vpack.c.bf16 %v1324_v12, %v1322_v13 }
 0x265   :  { %1583 = vmatmul.bf16.gmra.mxu2 %v1340_v14  ;;  %1681 = vmatmul.bf16.gmra.mxu0 %v1340_v14 }
 0x26c   :  { %v1696_v15 = vpop.f32.mrf.mxu1 }
 0x272   :  { %v1598_v16 = vpop.f32.mrf.mxu3  ;;  %v1647_v18 = vpop.f32.mrf.mxu0 }
 0x273   :  { %v1648_v21 = vadd.f32 %v1647_v18, %v3169_v19 }
 0x274   :  { %v1698_v20 = vpop.f32.mrf.mxu1 }
 0x275   :  { %v1697_v26 = vadd.f32 %v1696_v15, %v1648_v21 }
 0x277   :  { %v1737_v33 = vmax.f32 %v1697_v26, 0.0 }
 0x278   :  { %v1549_v22 = vpop.f32.mrf.mxu2 }
 0x279   :  { %v1550_v31 = vadd.f32 %v1549_v22, %v3172_v23 }
 0x27a   :  { %v1600_v24 = vpop.f32.mrf.mxu3  ;;  %v1649_v25 = vpop.f32.mrf.mxu0 }
 0x27b   :  { %v1650_v29 = vadd.f32 %v1649_v25, %v3169_v19  ;;  %v1599_v36 = vadd.f32 %v1598_v16, %v1550_v31 }
 0x27c   :  { %v1701_v30 = vpop.f32.mrf.mxu1 }
 0x27d   :  { %v1699_v32 = vadd.f32 %v1698_v20, %v1650_v29  ;;  %v1736_v43 = vmax.f32 %v1599_v36, 0.0 }
 0x27f   :  { %v1739_v34 = vmax.f32 %v1699_v32, 0.0 }
 0x280   :  { %v1551_v35 = vpop.f32.mrf.mxu2 }
 0x281   :  { %v1769_v37 = vpack.c.bf16 %v1739_v34, %v1737_v33  ;;  %v1552_v38 = vadd.f32 %v1551_v35, %v3172_v23 }
 0x282   :  { %v1603_v39 = vpop.f32.mrf.mxu3  ;;  %v1652_v40 = vpop.f32.mrf.mxu0 }
 0x283   :  { %v1601_v41 = vadd.f32 %v1600_v24, %v1552_v38  ;;  %1973 = vmatmul.bf16.vlgmr.msrb.gmra.mxu3 %v1769_v37  ;;  %v1653_v46 = vadd.f32 %v1652_v40, %v3169_v19 }
 0x284   :  { %v1703_v42 = vpop.f32.mrf.mxu1 }
 0x285   :  { %v1738_v44 = vmax.f32 %v1601_v41, 0.0  ;;  %v1702_v48 = vadd.f32 %v1701_v30, %v1653_v46 }
 0x287   :  { %v1768_v45 = vpack.c.bf16 %v1738_v44, %v1736_v43  ;;  %v1741_v55 = vmax.f32 %v1702_v48, 0.0 }
 0x288   :  { %v1554_v47 = vpop.f32.mrf.mxu2 }
 0x289   :  { %1924 = vmatmul.bf16.vlgmr.msrb.gmra.mxu2 %v1768_v45  ;;  %v1555_v52 = vadd.f32 %v1554_v47, %v3172_v23 }
 0x28a   :  { %v1605_v27 = vpop.f32.mrf.mxu3  ;;  %v1654_v28 = vpop.f32.mrf.mxu0 }
 0x28b   :  { %v1655_v50 = vadd.f32 %v1654_v28, %v3169_v19  ;;  %v1604_v58 = vadd.f32 %v1603_v39, %v1555_v52 }
 0x28c   :  { %v1706_v51 = vpop.f32.mrf.mxu1 }
 0x28d   :  { %v1704_v54 = vadd.f32 %v1703_v42, %v1655_v50  ;;  %v1740_v0 = vmax.f32 %v1604_v58, 0.0 }
 0x28f   :  { %v1743_v56 = vmax.f32 %v1704_v54, 0.0 }
 0x290   :  { %v1556_v57 = vpop.f32.mrf.mxu2 }
 0x291   :  { %v1557_v59 = vadd.f32 %v1556_v57, %v3172_v23  ;;  %v1771_v60 = vpack.c.bf16 %v1743_v56, %v1741_v55 }
 0x292   :  { %v1608_v49 = vpop.f32.mrf.mxu3  ;;  %v1657_v61 = vpop.f32.mrf.mxu0 }
 0x293   :  { %v1606_v62 = vadd.f32 %v1605_v27, %v1557_v59  ;;  %1978 = vmatmul.bf16.gmra.mxu3 %v1771_v60  ;;  %v1658_v2 = vadd.f32 %v1657_v61, %v3169_v19 }
 0x294   :  { %v1708_v63 = vpop.f32.mrf.mxu1 }
 0x295   :  { %v1742_v1 = vmax.f32 %v1606_v62, 0.0  ;;  %v1707_v6 = vadd.f32 %v1706_v51, %v1658_v2 }
 0x297   :  { %v1770_v3 = vpack.c.bf16 %v1742_v1, %v1740_v0  ;;  %v1745_v11 = vmax.f32 %v1707_v6, 0.0 }
 0x298   :  { %v1559_v4 = vpop.f32.mrf.mxu2 }
 0x299   :  { %1929 = vmatmul.bf16.gmra.mxu2 %v1770_v3  ;;  %v1560_v9 = vadd.f32 %v1559_v4, %v3172_v23 }
 0x29a   :  { %v1610_v53 = vpop.f32.mrf.mxu3  ;;  %v1659_v5 = vpop.f32.mrf.mxu0 }
 0x29b   :  { %v1660_v7 = vadd.f32 %v1659_v5, %v3169_v19  ;;  %v1609_v14 = vadd.f32 %v1608_v49, %v1560_v9 }
 0x29c   :  { %v1711_v8 = vpop.f32.mrf.mxu1 }
 0x29d   :  { %v1709_v10 = vadd.f32 %v1708_v63, %v1660_v7  ;;  %v1744_v22 = vmax.f32 %v1609_v14, 0.0 }
 0x29f   :  { %v1747_v13 = vmax.f32 %v1709_v10, 0.0 }
 0x2a0   :  { %v1561_v12 = vpop.f32.mrf.mxu2 }
 0x2a1   :  { %v1562_v15 = vadd.f32 %v1561_v12, %v3172_v23  ;;  %v1773_v17 = vpack.c.bf16 %v1747_v13, %v1745_v11 }
 0x2a2   :  { %v1613_v16 = vpop.f32.mrf.mxu3  ;;  %v1662_v18 = vpop.f32.mrf.mxu0 }
 0x2a3   :  { %v1611_v20 = vadd.f32 %v1610_v53, %v1562_v15  ;;  %1983 = vmatmul.bf16.gmra.mxu3 %v1773_v17  ;;  %v1663_v25 = vadd.f32 %v1662_v18, %v3169_v19 }
 0x2a4   :  { %v1713_v21 = vpop.f32.mrf.mxu1 }
 0x2a5   :  { %v1746_v24 = vmax.f32 %v1611_v20, 0.0  ;;  %v1712_v32 = vadd.f32 %v1711_v8, %v1663_v25 }
 0x2a7   :  { %v1772_v26 = vpack.c.bf16 %v1746_v24, %v1744_v22  ;;  %v1749_v37 = vmax.f32 %v1712_v32, 0.0 }
 0x2a8   :  { %v1564_v29 = vpop.f32.mrf.mxu2 }
 0x2a9   :  { %1934 = vmatmul.bf16.gmra.mxu2 %v1772_v26  ;;  %v1565_v35 = vadd.f32 %v1564_v29, %v3172_v23 }
 0x2aa   :  { %v1615_v30 = vpop.f32.mrf.mxu3  ;;  %v1664_v31 = vpop.f32.mrf.mxu0 }
 0x2ab   :  { %v1665_v33 = vadd.f32 %v1664_v31, %v3169_v19  ;;  %v1614_v40 = vadd.f32 %v1613_v16, %v1565_v35 }
 0x2ac   :  { %v1716_v34 = vpop.f32.mrf.mxu1 }
 0x2ad   :  { %v1714_v36 = vadd.f32 %v1713_v21, %v1665_v33  ;;  %v1748_v47 = vmax.f32 %v1614_v40, 0.0 }
 0x2af   :  { %v1751_v38 = vmax.f32 %v1714_v36, 0.0 }
 0x2b0   :  { %v1566_v39 = vpop.f32.mrf.mxu2 }
 0x2b1   :  { %v1567_v41 = vadd.f32 %v1566_v39, %v3172_v23  ;;  %v1775_v42 = vpack.c.bf16 %v1751_v38, %v1749_v37 }
 0x2b2   :  { %v1618_v43 = vpop.f32.mrf.mxu3  ;;  %v1667_v44 = vpop.f32.mrf.mxu0 }
 0x2b3   :  { %v1616_v45 = vadd.f32 %v1615_v30, %v1567_v41  ;;  %1988 = vmatmul.bf16.gmra.mxu3 %v1775_v42  ;;  %v1668_v28 = vadd.f32 %v1667_v44, %v3169_v19 }
 0x2b4   :  { %v1718_v46 = vpop.f32.mrf.mxu1 }
 0x2b5   :  { %v1750_v27 = vmax.f32 %v1616_v45, 0.0  ;;  %v1717_v54 = vadd.f32 %v1716_v34, %v1668_v28 }
 0x2b7   :  { %v1774_v48 = vpack.c.bf16 %v1750_v27, %v1748_v47  ;;  %v1753_v59 = vmax.f32 %v1717_v54, 0.0 }
 0x2b8   :  { %v1569_v50 = vpop.f32.mrf.mxu2 }
 0x2b9   :  { %1939 = vmatmul.bf16.gmra.mxu2 %v1774_v48  ;;  %v1570_v57 = vadd.f32 %v1569_v50, %v3172_v23 }
 0x2ba   :  { %v1620_v51 = vpop.f32.mrf.mxu3  ;;  %v1669_v52 = vpop.f32.mrf.mxu0 }
 0x2bb   :  { %v1670_v55 = vadd.f32 %v1669_v52, %v3169_v19  ;;  %v1619_v61 = vadd.f32 %v1618_v43, %v1570_v57 }
 0x2bc   :  { %v1721_v56 = vpop.f32.mrf.mxu1 }
 0x2bd   :  { %v1719_v58 = vadd.f32 %v1718_v46, %v1670_v55  ;;  %v1752_v4 = vmax.f32 %v1619_v61, 0.0 }
 0x2bf   :  { %v1755_v60 = vmax.f32 %v1719_v58, 0.0 }
 0x2c0   :  { %v1571_v49 = vpop.f32.mrf.mxu2 }
 0x2c1   :  { %v1572_v62 = vadd.f32 %v1571_v49, %v3172_v23  ;;  %v1777_v63 = vpack.c.bf16 %v1755_v60, %v1753_v59 }
 0x2c2   :  { %v1623_v0 = vpop.f32.mrf.mxu3  ;;  %v1672_v1 = vpop.f32.mrf.mxu0 }
 0x2c3   :  { %v1621_v2 = vadd.f32 %v1620_v51, %v1572_v62  ;;  %1993 = vmatmul.bf16.gmra.mxu3 %v1777_v63  ;;  %v1673_v5 = vadd.f32 %v1672_v1, %v3169_v19 }
 0x2c4   :  { %v1723_v3 = vpop.f32.mrf.mxu1 }
 0x2c5   :  { %v1754_v53 = vmax.f32 %v1621_v2, 0.0  ;;  %v1722_v10 = vadd.f32 %v1721_v56, %v1673_v5 }
 0x2c7   :  { %v1776_v6 = vpack.c.bf16 %v1754_v53, %v1752_v4  ;;  %v1757_v15 = vmax.f32 %v1722_v10, 0.0 }
 0x2c8   :  { %v1574_v7 = vpop.f32.mrf.mxu2 }
 0x2c9   :  { %1944 = vmatmul.bf16.gmra.mxu2 %v1776_v6  ;;  %v1575_v13 = vadd.f32 %v1574_v7, %v3172_v23 }
 0x2ca   :  { %v1625_v8 = vpop.f32.mrf.mxu3  ;;  %v1674_v9 = vpop.f32.mrf.mxu0 }
 0x2cb   :  { %v1675_v11 = vadd.f32 %v1674_v9, %v3169_v19  ;;  %v1624_v18 = vadd.f32 %v1623_v0, %v1575_v13 }
 0x2cc   :  { %v1726_v14 = vpop.f32.mrf.mxu1 }
 0x2cd   :  { %v1724_v12 = vadd.f32 %v1723_v3, %v1675_v11  ;;  %v1756_v26 = vmax.f32 %v1624_v18, 0.0 }
 0x2cf   :  { %v1759_v17 = vmax.f32 %v1724_v12, 0.0 }
 0x2d0   :  { %v1576_v16 = vpop.f32.mrf.mxu2 }
 0x2d1   :  { %v1577_v20 = vadd.f32 %v1576_v16, %v3172_v23  ;;  %v1779_v21 = vpack.c.bf16 %v1759_v17, %v1757_v15 }
 0x2d2   :  { %v1677_v22 = vpop.f32.mrf.mxu0  ;;  %v1628_v25 = vpop.f32.mrf.mxu3 }
 0x2d3   :  { %v1626_v24 = vadd.f32 %v1625_v8, %v1577_v20  ;;  %1998 = vmatmul.bf16.gmra.mxu3 %v1779_v21  ;;  %v1678_v30 = vadd.f32 %v1677_v22, %v3169_v19 }
 0x2d4   :  { %v1728_v32 = vpop.f32.mrf.mxu1 }
 0x2d5   :  { %v1758_v29 = vmax.f32 %v1626_v24, 0.0  ;;  %v1727_v35 = vadd.f32 %v1726_v14, %v1678_v30 }
 0x2d7   :  { %v1778_v31 = vpack.c.bf16 %v1758_v29, %v1756_v26  ;;  %v1761_v40 = vmax.f32 %v1727_v35, 0.0 }
 0x2d8   :  { %v1579_v33 = vpop.f32.mrf.mxu2 }
 0x2d9   :  { %1949 = vmatmul.bf16.gmra.mxu2 %v1778_v31  ;;  %v1580_v37 = vadd.f32 %v1579_v33, %v3172_v23 }
 0x2da   :  { %v1679_v34 = vpop.f32.mrf.mxu0  ;;  %v1630_v39 = vpop.f32.mrf.mxu3 }
 0x2db   :  { %v1680_v36 = vadd.f32 %v1679_v34, %v3169_v19  ;;  %v1629_v43 = vadd.f32 %v1628_v25, %v1580_v37 }
 0x2dc   :  { %v1731_v46 = vpop.f32.mrf.mxu1 }
 0x2dd   :  { %v1729_v38 = vadd.f32 %v1728_v32, %v1680_v36  ;;  %v1760_v28 = vmax.f32 %v1629_v43, 0.0 }
 0x2df   :  { %v1763_v41 = vmax.f32 %v1729_v38, 0.0 }
 0x2e0   :  { %v1581_v42 = vpop.f32.mrf.mxu2 }
 0x2e1   :  { %v1582_v44 = vadd.f32 %v1581_v42, %v3172_v23  ;;  %v1781_v45 = vpack.c.bf16 %v1763_v41, %v1761_v40 }
 0x2e2   :  { %v1682_v47 = vpop.f32.mrf.mxu0  ;;  %v1633_v52 = vpop.f32.mrf.mxu3 }
 0x2e3   :  { %v1631_v27 = vadd.f32 %v1630_v39, %v1582_v44  ;;  %2003 = vmatmul.bf16.gmra.mxu3 %v1781_v45  ;;  %v1683_v50 = vadd.f32 %v1682_v47, %v3169_v19 }
 0x2e4   :  { %v1733_v58 = vpop.f32.mrf.mxu1 }
 0x2e5   :  { %v1762_v48 = vmax.f32 %v1631_v27, 0.0  ;;  %v1732_v56 = vadd.f32 %v1731_v46, %v1683_v50 }
 0x2e7   :  { %v1780_v51 = vpack.c.bf16 %v1762_v48, %v1760_v28  ;;  %v1765_v49 = vmax.f32 %v1732_v56, 0.0 }
 0x2e8   :  { %v1584_v54 = vpop.f32.mrf.mxu2 }
 0x2e9   :  { %1954 = vmatmul.bf16.gmra.mxu2 %v1780_v51  ;;  %v1585_v59 = vadd.f32 %v1584_v54, %v3172_v23 }
 0x2ea   :  { %v1684_v55 = vpop.f32.mrf.mxu0  ;;  %v1635_v2 = vpop.f32.mrf.mxu3 }
 0x2eb   :  { %v1685_v57 = vadd.f32 %v1684_v55, %v3169_v19  ;;  %v1634_v63 = vadd.f32 %v1633_v52, %v1585_v59  ;;  %v3208_v19 = vld [vmem:[%s3242_s10] ss:$0 sm:$0xff]  ;;  %s2958_s10 = smov [#allocation14]  }
 0x2ec   :  { %s2034_s16 = sshll.u32 %s2958_s10, 4  ;;  %s2035_s16 = int_to_ptr.vmem [resolvable:$true] %s2034_s16 }
 0x2ed   :  { %v1734_v60 = vadd.f32 %v1733_v58, %v1685_v57  ;;  %v1764_v4 = vmax.f32 %v1634_v63, 0.0 }
 0x2ef   :  { %v1767_v61 = vmax.f32 %v1734_v60, 0.0 }
 0x2f0   :  { %v1586_v62 = vpop.f32.mrf.mxu2 }
 0x2f1   :  { %v1587_v0 = vadd.f32 %v1586_v62, %v3172_v23  ;;  %v1783_v1 = vpack.c.bf16 %v1767_v61, %v1765_v49 }
 0x2f3   :  { %v1636_v3 = vadd.f32 %v1635_v2, %v1587_v0  ;;  %2008 = vmatmul.bf16.gmra.mxu3 %v1783_v1 }
 0x2f5   :  { %v1766_v53 = vmax.f32 %v1636_v3, 0.0 }
 0x2f7   :  { %v1782_v5 = vpack.c.bf16 %v1766_v53, %v1764_v4 }
 0x2f9   :  { %1959 = vmatmul.bf16.gmra.mxu2 %v1782_v5 }
 0x306   :  { %v1974_v6 = vpop.f32.mrf.mxu3 }
 0x30c   :  { %v1925_v7 = vpop.f32.mrf.mxu2 }
 0x30d   :  { %v1926_v8 = vadd.f32 %v3208_v19, %v1925_v7 }
 0x30e   :  { %v1976_v9 = vpop.f32.mrf.mxu3 }
 0x30f   :  { %v1975_v10 = vadd.f32 %v1974_v6, %v1926_v8 }
 0x311   :  { %2014 = vst [vmem:[#allocation14] sm:$0xff] %v1975_v10 }
 0x314   :  { %v1927_v23 = vpop.f32.mrf.mxu2 }
 0x315   :  { %v1928_v11 = vadd.f32 %v3208_v19, %v1927_v23 }
 0x316   :  { %v1979_v13 = vpop.f32.mrf.mxu3 }
 0x317   :  { %v1977_v12 = vadd.f32 %v1976_v9, %v1928_v11 }
 0x319   :  { %2015 = vst [vmem:[#allocation14 + $0x8] sm:$0xff] %v1977_v12 }
 0x31c   :  { %v1930_v14 = vpop.f32.mrf.mxu2 }
 0x31d   :  { %v1931_v15 = vadd.f32 %v3208_v19, %v1930_v14 }
 0x31e   :  { %v1981_v17 = vpop.f32.mrf.mxu3 }
 0x31f   :  { %v1980_v16 = vadd.f32 %v1979_v13, %v1931_v15 }
 0x321   :  { %2016 = vst [vmem:[#allocation14 + $0x10] sm:$0xff] %v1980_v16 }
 0x324   :  { %v1932_v18 = vpop.f32.mrf.mxu2 }
 0x325   :  { %v1933_v20 = vadd.f32 %v3208_v19, %v1932_v18 }
 0x326   :  { %v1984_v21 = vpop.f32.mrf.mxu3 }
 0x327   :  { %v1982_v22 = vadd.f32 %v1981_v17, %v1933_v20 }
 0x329   :  { %2017 = vst [vmem:[#allocation14 + $0x18] sm:$0xff] %v1982_v22 }
 0x32c   :  { %v1935_v24 = vpop.f32.mrf.mxu2 }
 0x32d   :  { %v1936_v25 = vadd.f32 %v3208_v19, %v1935_v24 }
 0x32e   :  { %v1986_v26 = vpop.f32.mrf.mxu3 }
 0x32f   :  { %v1985_v29 = vadd.f32 %v1984_v21, %v1936_v25 }
 0x331   :  { %2018 = vst [vmem:[#allocation14 + $0x20] sm:$0xff] %v1985_v29 }
 0x334   :  { %v1937_v30 = vpop.f32.mrf.mxu2 }
 0x335   :  { %v1938_v31 = vadd.f32 %v3208_v19, %v1937_v30 }
 0x336   :  { %v1989_v32 = vpop.f32.mrf.mxu3 }
 0x337   :  { %v1987_v33 = vadd.f32 %v1986_v26, %v1938_v31 }
 0x339   :  { %2019 = vst [vmem:[#allocation14 + $0x28] sm:$0xff] %v1987_v33 }
 0x33c   :  { %v1940_v34 = vpop.f32.mrf.mxu2 }
 0x33d   :  { %v1941_v35 = vadd.f32 %v3208_v19, %v1940_v34 }
 0x33e   :  { %v1991_v36 = vpop.f32.mrf.mxu3 }
 0x33f   :  { %v1990_v37 = vadd.f32 %v1989_v32, %v1941_v35 }
 0x341   :  { %2020 = vst [vmem:[#allocation14 + $0x30] sm:$0xff] %v1990_v37 }
 0x344   :  { %v1942_v38 = vpop.f32.mrf.mxu2 }
 0x345   :  { %v1943_v39 = vadd.f32 %v3208_v19, %v1942_v38 }
 0x346   :  { %v1994_v40 = vpop.f32.mrf.mxu3 }
 0x347   :  { %v1992_v41 = vadd.f32 %v1991_v36, %v1943_v39 }
 0x349   :  { %2021 = vst [vmem:[#allocation14 + $0x38] sm:$0xff] %v1992_v41 }
 0x34c   :  { %v1945_v42 = vpop.f32.mrf.mxu2 }
 0x34d   :  { %v1946_v43 = vadd.f32 %v3208_v19, %v1945_v42 }
 0x34e   :  { %v1996_v44 = vpop.f32.mrf.mxu3 }
 0x34f   :  { %v1995_v45 = vadd.f32 %v1994_v40, %v1946_v43 }
 0x351   :  { %2022 = vst [vmem:[#allocation14 + $0x40] sm:$0xff] %v1995_v45 }
 0x354   :  { %v1947_v46 = vpop.f32.mrf.mxu2 }
 0x355   :  { %v1948_v47 = vadd.f32 %v3208_v19, %v1947_v46 }
 0x356   :  { %v1999_v27 = vpop.f32.mrf.mxu3 }
 0x357   :  { %v1997_v28 = vadd.f32 %v1996_v44, %v1948_v47 }
 0x359   :  { %2023 = vst [vmem:[#allocation14 + $0x48] sm:$0xff] %v1997_v28 }
 0x35c   :  { %v1950_v48 = vpop.f32.mrf.mxu2 }
 0x35d   :  { %v1951_v50 = vadd.f32 %v3208_v19, %v1950_v48 }
 0x35e   :  { %v2001_v51 = vpop.f32.mrf.mxu3 }
 0x35f   :  { %v2000_v52 = vadd.f32 %v1999_v27, %v1951_v50 }
 0x361   :  { %2024 = vst [vmem:[#allocation14 + $0x50] sm:$0xff] %v2000_v52 }
 0x364   :  { %v1952_v54 = vpop.f32.mrf.mxu2 }
 0x365   :  { %v1953_v55 = vadd.f32 %v3208_v19, %v1952_v54 }
 0x366   :  { %v2004_v57 = vpop.f32.mrf.mxu3 }
 0x367   :  { %v2002_v56 = vadd.f32 %v2001_v51, %v1953_v55 }
 0x369   :  { %2025 = vst [vmem:[#allocation14 + $0x58] sm:$0xff] %v2002_v56 }
 0x36c   :  { %v1955_v58 = vpop.f32.mrf.mxu2 }
 0x36d   :  { %v1956_v59 = vadd.f32 %v3208_v19, %v1955_v58 }
 0x36e   :  { %v2006_v49 = vpop.f32.mrf.mxu3 }
 0x36f   :  { %v2005_v60 = vadd.f32 %v2004_v57, %v1956_v59 }
 0x371   :  { %2026 = vst [vmem:[#allocation14 + $0x60] sm:$0xff] %v2005_v60 }
 0x374   :  { %v1957_v61 = vpop.f32.mrf.mxu2 }
 0x375   :  { %v1958_v62 = vadd.f32 %v3208_v19, %v1957_v61 }
 0x376   :  { %v2009_v0 = vpop.f32.mrf.mxu3 }
 0x377   :  { %v2007_v63 = vadd.f32 %v2006_v49, %v1958_v62 }
 0x379   :  { %2027 = vst [vmem:[#allocation14 + $0x68] sm:$0xff] %v2007_v63 }
 0x37c   :  { %v1960_v1 = vpop.f32.mrf.mxu2 }
 0x37d   :  { %v1961_v2 = vadd.f32 %v3208_v19, %v1960_v1 }
 0x37e   :  { %v2011_v5 = vpop.f32.mrf.mxu3 }
 0x37f   :  { %v2010_v3 = vadd.f32 %v2009_v0, %v1961_v2 }
 0x381   :  { %2028 = vst [vmem:[#allocation14 + $0x70] sm:$0xff] %v2010_v3 }
 0x384   :  { %v1962_v4 = vpop.f32.mrf.mxu2 }
 0x385   :  { %v1963_v53 = vadd.f32 %v3208_v19, %v1962_v4 }
 0x387   :  { %v2012_v6 = vadd.f32 %v2011_v5, %v1963_v53 }
 0x389   :  { %2029 = vst [vmem:[#allocation14 + $0x78] sm:$0xff] %v2012_v6 }
 0x38a   :  { %2042 = dma.vmem_to_hbm [thread:$0]  %s2035_s16, 2048, %s2037_s18, [#allocation4], %s2948_s25, %s2948_s25, %s2949_s26  }
 0x38b   :  { %2945 = dma.done.wait [#allocation4], 2048  }
 0x38c   :  { %2946 = vsyncadd [#allocation4], 4294965248 }
 0x38d   :  { %2047 = vsyncpa [#allocation3], 1 }
 0x38e   :  { %2048 = vsyncpa [#allocation6], 1 }
 0x38f   :  { %2049 = vsyncpa [#allocation9], 1 }
 0x390   :  { %2050 = vsyncpa [#allocation12], 1 }
 0x391   :  { %2051 = vsyncpa [#allocation4], 1 }

</bundles_post_ra>
